<compile_context>
chip_gen: v7x
topology: tpu7x:2x2x1
jax: 0.10.0
libtpu: 0.0.40
codegen_flags: <defaults>
</compile_context>

<pallas_src>
import functools

import jax
import jax.numpy as jnp
from jax import lax
from jax.experimental import pallas as pl
from jax.experimental.pallas import tpu as pltpu

_EPS = 1e-5


# ---------------------------------------------------------------------------
# Fused kernel: conv1x1+BN+ReLU -> conv3x3+BN+ReLU -> conv1x1+BN+ReLU
# Layout inside the kernel: rows = channels (sublanes), cols = H*W (lanes).
# ---------------------------------------------------------------------------
def _bottleneck_kernel(x_ref, w1_ref, b1_ref, w2s_ref, b2_ref, w3_ref, b3_ref,
                       wmask_ref, o_ref, hp_ref, col_ref,
                       *, hw, hw_p, width, pad, dilation):
    cdt = x_ref.dtype                      # MXU feed dtype
    planes = w1_ref.shape[0]

    # ---- stage 1: 1x1 conv (BN scale folded into W1) + shift + ReLU -------
    h1 = jnp.dot(w1_ref[...], x_ref[...], preferred_element_type=jnp.float32)
    h1 = jnp.maximum(h1 + b1_ref[...], 0.0)                 # (P, HWp) f32

    # ---- stage 2: 3x3 dilated conv via in-VMEM im2col + ONE MXU matmul ----
    # Persistent padded activation scratch hp_ref: (P, HWp + 2*pad).
    # Write the data, then zero the leading pad and the trailing region
    # (lane-alignment tail + pad) — the trailing store also erases the
    # garbage stage-1 values produced for the alignment tail, preserving
    # conv2's zero-padding semantics.
    hp_ref[:, pad:pad + hw_p] = h1.astype(cdt)
    hp_ref[:, :pad] = jnp.zeros((planes, pad), cdt)
    hp_ref[:, pad + hw:pad + hw_p + pad] = jnp.zeros(
        (planes, hw_p - hw + pad), cdt)

    # Pack the 9 lane-shifted taps into the (9P, HWp) im2col scratch.
    # Horizontal taps (kw != 1) are masked so they never wrap across rows;
    # out-of-image vertical taps land in the zero pad automatically.
    for kh in range(3):
        for kw in range(3):
            t = 3 * kh + kw
            off = pad + dilation * ((kh - 1) * width + (kw - 1))
            tap = hp_ref[:, off:off + hw_p]                  # (P, HWp)
            if kw == 0:
                tap = tap * wmask_ref[0]
            elif kw == 2:
                tap = tap * wmask_ref[1]
            col_ref[t * planes:(t + 1) * planes, :] = tap

    # Single wide contraction: (P, 9P) @ (9P, HWp) — feeds the full MXU.
    h2 = jnp.dot(w2s_ref[...], col_ref[...],
                 preferred_element_type=jnp.float32)
    h2 = jnp.maximum(h2 + b2_ref[...], 0.0)                  # (P, HWp) f32

    # ---- stage 3: 1x1 conv to 4*planes + shift + ReLU ----------------------
    h3 = jnp.dot(w3_ref[...], h2.astype(cdt),
                 preferred_element_type=jnp.float32)
    o_ref[...] = jnp.maximum(h3 + b3_ref[...], 0.0).astype(o_ref.dtype)


# ---------------------------------------------------------------------------
# Wrapper
# ---------------------------------------------------------------------------
def _fold_bn(w_mat, gamma, beta, mean, var):
    """Fold eval-mode BatchNorm into conv weights: returns (W*scale, shift)."""
    s = gamma / jnp.sqrt(var + _EPS)
    return w_mat * s[:, None], (beta - mean * s)[:, None].astype(jnp.float32)


def _pick_vmem_limit_bytes():
    """Per-generation VMEM limit: headroom below physical capacity."""
    cap = 128 * 1024 * 1024
    try:
        info = pltpu.get_tpu_info()
        cap = int(getattr(info, "vmem_capacity_bytes", cap) or cap)
    except Exception:
        pass
    # v7x: 64 MiB physical -> ~48 MiB; v5e/v6e: 128 MiB -> ~96 MiB.
    return min((cap * 3) // 4, 100 * 1024 * 1024)


def bottleneck_aux_forward(x, params, *, stride=1, dilation=1,
                           compute_dtype=jnp.bfloat16):
    """Pallas forward of BottleneckAUX (NCHW in, NCHW out)."""
    if stride != 1:
        # TODO(synk): stride != 1 (downsampling conv2) not implemented.
        raise NotImplementedError("stride != 1 is not supported")

    n, cin, height, width = x.shape
    hw = height * width
    hw_p = ((hw + 127) // 128) * 128            # lane-aligned spatial extent

    w1, w2, w3 = params["conv1_w"], params["conv2_w"], params["conv3_w"]
    planes, cout = w1.shape[0], w3.shape[0]

    # Fold eval-mode BN scales into the weights; keep shifts as (C,1) f32.
    w1m, b1 = _fold_bn(w1[:, :, 0, 0], *params["bn1"])          # (P,Cin),(P,1)
    w3m, b3 = _fold_bn(w3[:, :, 0, 0], *params["bn3"])          # (4P,P),(4P,1)
    g2, be2, m2, v2 = params["bn2"]
    s2 = g2 / jnp.sqrt(v2 + _EPS)
    b2 = (be2 - m2 * s2)[:, None].astype(jnp.float32)           # (P,1)
    # (O,I,kh,kw)*scale -> (O,kh,kw,I) -> (O, 9I): tap t=3*kh+kw occupies
    # columns [t*P, (t+1)*P), matching the kernel's im2col packing order.
    w2stack = jnp.transpose(w2 * s2[:, None, None, None],
                            (0, 2, 3, 1)).reshape(planes, 9 * planes)

    # Row-wrap validity masks for the horizontal taps (output coordinates),
    # zero-extended over the lane-alignment tail.
    wpos = jnp.arange(width)
    left_ok = jnp.tile(wpos - dilation >= 0, height).astype(compute_dtype)
    right_ok = jnp.tile(wpos + dilation < width, height).astype(compute_dtype)
    wmask = jnp.stack([left_ok, right_ok])                      # (2, hw)
    if hw_p != hw:
        wmask = jnp.pad(wmask, ((0, 0), (0, hw_p - hw)))
    wmask = wmask.reshape(2, 1, hw_p)

    # Zero padding ahead of / behind the flattened spatial axis, rounded to a
    # lane multiple so scratch writes stay vreg-aligned; pad >= dil*(width+1)
    # covers every vertical/horizontal tap offset.
    pad = ((dilation * (width + 1) + 127) // 128) * 128

    xf = x.reshape(n, cin, hw).astype(compute_dtype)            # free reshape
    if hw_p != hw:
        xf = jnp.pad(xf, ((0, 0), (0, 0), (0, hw_p - hw)))

    kernel = functools.partial(_bottleneck_kernel, hw=hw, hw_p=hw_p,
                               width=width, pad=pad, dilation=dilation)

    out = pl.pallas_call(
        kernel,
        out_shape=jax.ShapeDtypeStruct((n, cout, hw_p), x.dtype),
        grid_spec=pltpu.PrefetchScalarGridSpec(
            num_scalar_prefetch=0,
            grid=(n,),                                          # one image/step
            in_specs=[
                pl.BlockSpec((None, cin, hw_p), lambda b: (b, 0, 0)),       # x
                pl.BlockSpec((planes, cin), lambda b: (0, 0)),              # W1'
                pl.BlockSpec((planes, 1), lambda b: (0, 0)),                # b1
                pl.BlockSpec((planes, 9 * planes), lambda b: (0, 0)),       # W2'
                pl.BlockSpec((planes, 1), lambda b: (0, 0)),                # b2
                pl.BlockSpec((cout, planes), lambda b: (0, 0)),             # W3'
                pl.BlockSpec((cout, 1), lambda b: (0, 0)),                  # b3
                pl.BlockSpec((2, 1, hw_p), lambda b: (0, 0, 0)),            # masks
            ],
            out_specs=pl.BlockSpec((None, cout, hw_p), lambda b: (b, 0, 0)),
            scratch_shapes=[
                pltpu.VMEM((planes, hw_p + 2 * pad), compute_dtype),  # padded h1
                pltpu.VMEM((9 * planes, hw_p), compute_dtype),        # im2col
            ],
        ),
        compiler_params=pltpu.CompilerParams(
            # Batch steps are independent -> v7x's two TensorCores split them;
            # no effect on single-core v5e/v6e.
            dimension_semantics=("parallel",),
            vmem_limit_bytes=_pick_vmem_limit_bytes(),
        ),
    )(xf, w1m.astype(compute_dtype), b1, w2stack.astype(compute_dtype), b2,
      w3m.astype(compute_dtype), b3, wmask)

    if hw_p != hw:
        out = out[:, :, :hw]
    return out.reshape(n, cout, height, width)


# ---------------------------------------------------------------------------
# Pure-JAX reference (lax convs, eval-mode BN) for correctness checking
# ---------------------------------------------------------------------------
def ref_forward(x, params, *, stride=1, dilation=1):
    def bn(z, gamma, beta, mean, var):
        inv = gamma / jnp.sqrt(var + _EPS)
        return ((z - mean[None, :, None, None]) * inv[None, :, None, None]
                + beta[None, :, None, None])

    def conv(z, w, s, p, d):
        return lax.conv_general_dilated(
            z, w, (s, s), ((p, p), (p, p)), rhs_dilation=(d, d),
            dimension_numbers=("NCHW", "OIHW", "NCHW"),
            precision=lax.Precision.HIGHEST)

    out = jax.nn.relu(bn(conv(x, params["conv1_w"], 1, 0, 1), *params["bn1"]))
    out = jax.nn.relu(bn(conv(out, params["conv2_w"], stride, dilation, dilation),
                         *params["bn2"]))
    out = jax.nn.relu(bn(conv(out, params["conv3_w"], 1, 0, 1), *params["bn3"]))
    return out


# ---------------------------------------------------------------------------
if __name__ == "__main__":
    B, INPLANES, PLANES, H, W = 2, 32, 16, 16, 16
    key = jax.random.PRNGKey(0)
    ks = iter(jax.random.split(key, 32))

    def rnd(shape, s=0.1):
        return s * jax.random.normal(next(ks), shape, jnp.float32)

    def bn_params(c):
        gamma = 1.0 + 0.1 * jax.random.normal(next(ks), (c,), jnp.float32)
        beta = rnd((c,))
        rmean = rnd((c,))
        rvar = 0.5 + jax.random.uniform(next(ks), (c,), jnp.float32)
        return (gamma, beta, rmean, rvar)

    params = {
        "conv1_w": rnd((PLANES, INPLANES, 1, 1)),
        "bn1": bn_params(PLANES),
        "conv2_w": rnd((PLANES, PLANES, 3, 3)),
        "bn2": bn_params(PLANES),
        "conv3_w": rnd((4 * PLANES, PLANES, 1, 1)),
        "bn3": bn_params(4 * PLANES),
    }
    x = jax.random.normal(next(ks), (B, INPLANES, H, W), jnp.float32)
    ref = jax.block_until_ready(ref_forward(x, params))

    # --- f32 MXU feed: tight check against the lax reference -----------------
    out_f32 = jax.block_until_ready(
        bottleneck_aux_forward(x, params, compute_dtype=jnp.float32))
    assert out_f32.shape == ref.shape == (B, 4 * PLANES, H, W)
    assert out_f32.dtype == ref.dtype
    err = float(jnp.max(jnp.abs(out_f32 - ref)))
    assert jnp.allclose(out_f32, ref, rtol=1e-4, atol=1e-4), err

    # --- default bf16 MXU feed (f32 accumulation / epilogue) -----------------
    # NOTE: activations are intentionally re-quantized to bf16 between stages.
    out_bf16 = jax.block_until_ready(bottleneck_aux_forward(x, params))
    err_bf16 = float(jnp.max(jnp.abs(out_bf16 - ref)))
    assert err_bf16 < 5e-2, err_bf16

    # --- dilation=2 (padding == dilation, as in the module) ------------------
    out_d2 = jax.block_until_ready(
        bottleneck_aux_forward(x, params, dilation=2, compute_dtype=jnp.float32))
    ref_d2 = jax.block_until_ready(ref_forward(x, params, dilation=2))
    err_d2 = float(jnp.max(jnp.abs(out_d2 - ref_d2)))
    assert jnp.allclose(out_d2, ref_d2, rtol=1e-4, atol=1e-4), err_d2

    # --- H*W not a multiple of 128: exercises the lane-alignment tail path ---
    x2 = jax.random.normal(next(ks), (B, INPLANES, 12, 12), jnp.float32)
    out_np = jax.block_until_ready(
        bottleneck_aux_forward(x2, params, compute_dtype=jnp.float32))
    ref_np = jax.block_until_ready(ref_forward(x2, params))
    err_np = float(jnp.max(jnp.abs(out_np - ref_np)))
    assert jnp.allclose(out_np, ref_np, rtol=1e-4, atol=1e-4), err_np

    print("KERNEL_OK")
</pallas_src>

<mosaic_0001>
module attributes {stable_mosaic.version = 11 : i64} {
  func.func @_bottleneck_kernel(%arg0: i32, %arg1: memref<1x32x256xf32, #tpu.memory_space<vmem>>, %arg2: memref<16x32xf32, #tpu.memory_space<vmem>>, %arg3: memref<16x1xf32, #tpu.memory_space<vmem>>, %arg4: memref<16x144xf32, #tpu.memory_space<vmem>>, %arg5: memref<16x1xf32, #tpu.memory_space<vmem>>, %arg6: memref<64x16xf32, #tpu.memory_space<vmem>>, %arg7: memref<64x1xf32, #tpu.memory_space<vmem>>, %arg8: memref<2x1x256xf32, #tpu.memory_space<vmem>>, %arg9: memref<1x64x256xf32, #tpu.memory_space<vmem>>, %arg10: memref<16x512xf32, #tpu.memory_space<vmem>>, %arg11: memref<144x256xf32, #tpu.memory_space<vmem>>) attributes {dimension_semantics = [#tpu.dimension_semantics<parallel>], iteration_bounds = array<i64: 2>, scalar_prefetch = 0 : i64, scratch_operands = 2 : i64, tpu.core_type = #tpu.core_type<tc>, window_params = [{transform_indices = @transform_0, window_bounds = array<i64: 1, 32, 256>}, {pipeline_mode = #tpu.pipeline_mode<synchronous>, transform_indices = @transform_1, window_bounds = array<i64: 16, 32>}, {pipeline_mode = #tpu.pipeline_mode<synchronous>, transform_indices = @transform_2, window_bounds = array<i64: 16, 1>}, {pipeline_mode = #tpu.pipeline_mode<synchronous>, transform_indices = @transform_3, window_bounds = array<i64: 16, 144>}, {pipeline_mode = #tpu.pipeline_mode<synchronous>, transform_indices = @transform_4, window_bounds = array<i64: 16, 1>}, {pipeline_mode = #tpu.pipeline_mode<synchronous>, transform_indices = @transform_5, window_bounds = array<i64: 64, 16>}, {pipeline_mode = #tpu.pipeline_mode<synchronous>, transform_indices = @transform_6, window_bounds = array<i64: 64, 1>}, {pipeline_mode = #tpu.pipeline_mode<synchronous>, transform_indices = @transform_7, window_bounds = array<i64: 2, 1, 256>}, {transform_indices = @transform_8, window_bounds = array<i64: 1, 64, 256>}]} {
    %c0 = arith.constant 0 : index
    %c0_0 = arith.constant 0 : index
    %0 = vector.load %arg2[%c0, %c0_0] : memref<16x32xf32, #tpu.memory_space<vmem>>, vector<16x32xf32>
    %c0_1 = arith.constant 0 : index
    %c0_2 = arith.constant 0 : index
    %c0_3 = arith.constant 0 : index
    %1 = vector.load %arg1[%c0_1, %c0_2, %c0_3] : memref<1x32x256xf32, #tpu.memory_space<vmem>>, vector<1x32x256xf32>
    %2 = vector.shape_cast %1 : vector<1x32x256xf32> to vector<32x256xf32>
    %cst = arith.constant dense<0.000000e+00> : vector<16x256xf32>
    %3 = tpu.matmul %0, %2, %cst {dimension_numbers = #tpu.dot_dimension_numbers<[1], [0], [0], [1], [0, 0, 1, 1], [], []>} : vector<16x32xf32>, vector<32x256xf32>, vector<16x256xf32> -> vector<16x256xf32>
    %c0_4 = arith.constant 0 : index
    %c0_5 = arith.constant 0 : index
    %4 = vector.load %arg3[%c0_4, %c0_5] : memref<16x1xf32, #tpu.memory_space<vmem>>, vector<16x1xf32>
    %5 = vector.broadcast %4 : vector<16x1xf32> to vector<16x256xf32>
    %6 = arith.addf %3, %5 : vector<16x256xf32>
    %cst_6 = arith.constant 0.000000e+00 : f32
    %7 = vector.broadcast %cst_6 : f32 to vector<16x256xf32>
    %8 = arith.maximumf %6, %7 : vector<16x256xf32>
    %c0_7 = arith.constant 0 : index
    %c128 = arith.constant 128 : index
    %9 = vector.load %arg10[%c0_7, %c128] : memref<16x512xf32, #tpu.memory_space<vmem>>, vector<16x256xf32>
    tpu.vector_store %arg10[%c0_7, %c128], %8 {strides = array<i32>} : memref<16x512xf32, #tpu.memory_space<vmem>>, vector<16x256xf32>,
    %cst_8 = arith.constant 0.000000e+00 : f32
    %10 = vector.broadcast %cst_8 : f32 to vector<16x128xf32>
    %c0_9 = arith.constant 0 : index
    %c0_10 = arith.constant 0 : index
    %11 = vector.load %arg10[%c0_9, %c0_10] : memref<16x512xf32, #tpu.memory_space<vmem>>, vector<16x128xf32>
    tpu.vector_store %arg10[%c0_9, %c0_10], %10 {strides = array<i32>} : memref<16x512xf32, #tpu.memory_space<vmem>>, vector<16x128xf32>,
    %cst_11 = arith.constant 0.000000e+00 : f32
    %12 = vector.broadcast %cst_11 : f32 to vector<16x128xf32>
    %c0_12 = arith.constant 0 : index
    %c384 = arith.constant 384 : index
    %13 = vector.load %arg10[%c0_12, %c384] : memref<16x512xf32, #tpu.memory_space<vmem>>, vector<16x128xf32>
    tpu.vector_store %arg10[%c0_12, %c384], %12 {strides = array<i32>} : memref<16x512xf32, #tpu.memory_space<vmem>>, vector<16x128xf32>,
    %c0_13 = arith.constant 0 : index
    %c111 = arith.constant 111 : index
    %14 = vector.load %arg10[%c0_13, %c111] : memref<16x512xf32, #tpu.memory_space<vmem>>, vector<16x256xf32>
    %c0_14 = arith.constant 0 : index
    %c0_15 = arith.constant 0 : index
    %c0_16 = arith.constant 0 : index
    %15 = vector.load %arg8[%c0_14, %c0_15, %c0_16] : memref<2x1x256xf32, #tpu.memory_space<vmem>>, vector<1x1x256xf32>
    %16 = vector.shape_cast %15 : vector<1x1x256xf32> to vector<1x256xf32>
    %17 = vector.broadcast %16 : vector<1x256xf32> to vector<16x256xf32>
    %18 = arith.mulf %14, %17 : vector<16x256xf32>
    %c0_17 = arith.constant 0 : index
    %c0_18 = arith.constant 0 : index
    %19 = vector.load %arg11[%c0_17, %c0_18] : memref<144x256xf32, #tpu.memory_space<vmem>>, vector<16x256xf32>
    tpu.vector_store %arg11[%c0_17, %c0_18], %18 {strides = array<i32>} : memref<144x256xf32, #tpu.memory_space<vmem>>, vector<16x256xf32>,
    %c0_19 = arith.constant 0 : index
    %c112 = arith.constant 112 : index
    %20 = vector.load %arg10[%c0_19, %c112] : memref<16x512xf32, #tpu.memory_space<vmem>>, vector<16x256xf32>
    %c16 = arith.constant 16 : index
    %c0_20 = arith.constant 0 : index
    %21 = vector.load %arg11[%c16, %c0_20] : memref<144x256xf32, #tpu.memory_space<vmem>>, vector<16x256xf32>
    tpu.vector_store %arg11[%c16, %c0_20], %20 {strides = array<i32>} : memref<144x256xf32, #tpu.memory_space<vmem>>, vector<16x256xf32>,
    %c0_21 = arith.constant 0 : index
    %c113 = arith.constant 113 : index
    %22 = vector.load %arg10[%c0_21, %c113] : memref<16x512xf32, #tpu.memory_space<vmem>>, vector<16x256xf32>
    %c1 = arith.constant 1 : index
    %c0_22 = arith.constant 0 : index
    %c0_23 = arith.constant 0 : index
    %23 = vector.load %arg8[%c1, %c0_22, %c0_23] : memref<2x1x256xf32, #tpu.memory_space<vmem>>, vector<1x1x256xf32>
    %24 = vector.shape_cast %23 : vector<1x1x256xf32> to vector<1x256xf32>
    %25 = vector.broadcast %24 : vector<1x256xf32> to vector<16x256xf32>
    %26 = arith.mulf %22, %25 : vector<16x256xf32>
    %c32 = arith.constant 32 : index
    %c0_24 = arith.constant 0 : index
    %27 = vector.load %arg11[%c32, %c0_24] : memref<144x256xf32, #tpu.memory_space<vmem>>, vector<16x256xf32>
    tpu.vector_store %arg11[%c32, %c0_24], %26 {strides = array<i32>} : memref<144x256xf32, #tpu.memory_space<vmem>>, vector<16x256xf32>,
    %c0_25 = arith.constant 0 : index
    %c127 = arith.constant 127 : index
    %28 = vector.load %arg10[%c0_25, %c127] : memref<16x512xf32, #tpu.memory_space<vmem>>, vector<16x256xf32>
    %c0_26 = arith.constant 0 : index
    %c0_27 = arith.constant 0 : index
    %c0_28 = arith.constant 0 : index
    %29 = vector.load %arg8[%c0_26, %c0_27, %c0_28] : memref<2x1x256xf32, #tpu.memory_space<vmem>>, vector<1x1x256xf32>
    %30 = vector.shape_cast %29 : vector<1x1x256xf32> to vector<1x256xf32>
    %31 = vector.broadcast %30 : vector<1x256xf32> to vector<16x256xf32>
    %32 = arith.mulf %28, %31 : vector<16x256xf32>
    %c48 = arith.constant 48 : index
    %c0_29 = arith.constant 0 : index
    %33 = vector.load %arg11[%c48, %c0_29] : memref<144x256xf32, #tpu.memory_space<vmem>>, vector<16x256xf32>
    tpu.vector_store %arg11[%c48, %c0_29], %32 {strides = array<i32>} : memref<144x256xf32, #tpu.memory_space<vmem>>, vector<16x256xf32>,
    %c0_30 = arith.constant 0 : index
    %c128_31 = arith.constant 128 : index
    %34 = vector.load %arg10[%c0_30, %c128_31] : memref<16x512xf32, #tpu.memory_space<vmem>>, vector<16x256xf32>
    %c64 = arith.constant 64 : index
    %c0_32 = arith.constant 0 : index
    %35 = vector.load %arg11[%c64, %c0_32] : memref<144x256xf32, #tpu.memory_space<vmem>>, vector<16x256xf32>
    tpu.vector_store %arg11[%c64, %c0_32], %34 {strides = array<i32>} : memref<144x256xf32, #tpu.memory_space<vmem>>, vector<16x256xf32>,
    %c0_33 = arith.constant 0 : index
    %c129 = arith.constant 129 : index
    %36 = vector.load %arg10[%c0_33, %c129] : memref<16x512xf32, #tpu.memory_space<vmem>>, vector<16x256xf32>
    %c1_34 = arith.constant 1 : index
    %c0_35 = arith.constant 0 : index
    %c0_36 = arith.constant 0 : index
    %37 = vector.load %arg8[%c1_34, %c0_35, %c0_36] : memref<2x1x256xf32, #tpu.memory_space<vmem>>, vector<1x1x256xf32>
    %38 = vector.shape_cast %37 : vector<1x1x256xf32> to vector<1x256xf32>
    %39 = vector.broadcast %38 : vector<1x256xf32> to vector<16x256xf32>
    %40 = arith.mulf %36, %39 : vector<16x256xf32>
    %c80 = arith.constant 80 : index
    %c0_37 = arith.constant 0 : index
    %41 = vector.load %arg11[%c80, %c0_37] : memref<144x256xf32, #tpu.memory_space<vmem>>, vector<16x256xf32>
    tpu.vector_store %arg11[%c80, %c0_37], %40 {strides = array<i32>} : memref<144x256xf32, #tpu.memory_space<vmem>>, vector<16x256xf32>,
    %c0_38 = arith.constant 0 : index
    %c143 = arith.constant 143 : index
    %42 = vector.load %arg10[%c0_38, %c143] : memref<16x512xf32, #tpu.memory_space<vmem>>, vector<16x256xf32>
    %c0_39 = arith.constant 0 : index
    %c0_40 = arith.constant 0 : index
    %c0_41 = arith.constant 0 : index
    %43 = vector.load %arg8[%c0_39, %c0_40, %c0_41] : memref<2x1x256xf32, #tpu.memory_space<vmem>>, vector<1x1x256xf32>
    %44 = vector.shape_cast %43 : vector<1x1x256xf32> to vector<1x256xf32>
    %45 = vector.broadcast %44 : vector<1x256xf32> to vector<16x256xf32>
    %46 = arith.mulf %42, %45 : vector<16x256xf32>
    %c96 = arith.constant 96 : index
    %c0_42 = arith.constant 0 : index
    %47 = vector.load %arg11[%c96, %c0_42] : memref<144x256xf32, #tpu.memory_space<vmem>>, vector<16x256xf32>
    tpu.vector_store %arg11[%c96, %c0_42], %46 {strides = array<i32>} : memref<144x256xf32, #tpu.memory_space<vmem>>, vector<16x256xf32>,
    %c0_43 = arith.constant 0 : index
    %c144 = arith.constant 144 : index
    %48 = vector.load %arg10[%c0_43, %c144] : memref<16x512xf32, #tpu.memory_space<vmem>>, vector<16x256xf32>
    %c112_44 = arith.constant 112 : index
    %c0_45 = arith.constant 0 : index
    %49 = vector.load %arg11[%c112_44, %c0_45] : memref<144x256xf32, #tpu.memory_space<vmem>>, vector<16x256xf32>
    tpu.vector_store %arg11[%c112_44, %c0_45], %48 {strides = array<i32>} : memref<144x256xf32, #tpu.memory_space<vmem>>, vector<16x256xf32>,
    %c0_46 = arith.constant 0 : index
    %c145 = arith.constant 145 : index
    %50 = vector.load %arg10[%c0_46, %c145] : memref<16x512xf32, #tpu.memory_space<vmem>>, vector<16x256xf32>
    %c1_47 = arith.constant 1 : index
    %c0_48 = arith.constant 0 : index
    %c0_49 = arith.constant 0 : index
    %51 = vector.load %arg8[%c1_47, %c0_48, %c0_49] : memref<2x1x256xf32, #tpu.memory_space<vmem>>, vector<1x1x256xf32>
    %52 = vector.shape_cast %51 : vector<1x1x256xf32> to vector<1x256xf32>
    %53 = vector.broadcast %52 : vector<1x256xf32> to vector<16x256xf32>
    %54 = arith.mulf %50, %53 : vector<16x256xf32>
    %c128_50 = arith.constant 128 : index
    %c0_51 = arith.constant 0 : index
    %55 = vector.load %arg11[%c128_50, %c0_51] : memref<144x256xf32, #tpu.memory_space<vmem>>, vector<16x256xf32>
    tpu.vector_store %arg11[%c128_50, %c0_51], %54 {strides = array<i32>} : memref<144x256xf32, #tpu.memory_space<vmem>>, vector<16x256xf32>,
    %c0_52 = arith.constant 0 : index
    %c0_53 = arith.constant 0 : index
    %56 = vector.load %arg4[%c0_52, %c0_53] : memref<16x144xf32, #tpu.memory_space<vmem>>, vector<16x144xf32>
    %c0_54 = arith.constant 0 : index
    %c0_55 = arith.constant 0 : index
    %57 = vector.load %arg11[%c0_54, %c0_55] : memref<144x256xf32, #tpu.memory_space<vmem>>, vector<144x256xf32>
    %cst_56 = arith.constant dense<0.000000e+00> : vector<16x256xf32>
    %58 = tpu.matmul %56, %57, %cst_56 {dimension_numbers = #tpu.dot_dimension_numbers<[1], [0], [0], [1], [0, 0, 1, 1], [], []>} : vector<16x144xf32>, vector<144x256xf32>, vector<16x256xf32> -> vector<16x256xf32>
    %c0_57 = arith.constant 0 : index
    %c0_58 = arith.constant 0 : index
    %59 = vector.load %arg5[%c0_57, %c0_58] : memref<16x1xf32, #tpu.memory_space<vmem>>, vector<16x1xf32>
    %60 = vector.broadcast %59 : vector<16x1xf32> to vector<16x256xf32>
    %61 = arith.addf %58, %60 : vector<16x256xf32>
    %cst_59 = arith.constant 0.000000e+00 : f32
    %62 = vector.broadcast %cst_59 : f32 to vector<16x256xf32>
    %63 = arith.maximumf %61, %62 : vector<16x256xf32>
    %c0_60 = arith.constant 0 : index
    %c0_61 = arith.constant 0 : index
    %64 = vector.load %arg6[%c0_60, %c0_61] : memref<64x16xf32, #tpu.memory_space<vmem>>, vector<64x16xf32>
    %cst_62 = arith.constant dense<0.000000e+00> : vector<64x256xf32>
    %65 = tpu.matmul %64, %63, %cst_62 {dimension_numbers = #tpu.dot_dimension_numbers<[1], [0], [0], [1], [0, 0, 1, 1], [], []>} : vector<64x16xf32>, vector<16x256xf32>, vector<64x256xf32> -> vector<64x256xf32>
    %c0_63 = arith.constant 0 : index
    %c0_64 = arith.constant 0 : index
    %66 = vector.load %arg7[%c0_63, %c0_64] : memref<64x1xf32, #tpu.memory_space<vmem>>, vector<64x1xf32>
    %67 = vector.broadcast %66 : vector<64x1xf32> to vector<64x256xf32>
    %68 = arith.addf %65, %67 : vector<64x256xf32>
    %cst_65 = arith.constant 0.000000e+00 : f32
    %69 = vector.broadcast %cst_65 : f32 to vector<64x256xf32>
    %70 = arith.maximumf %68, %69 : vector<64x256xf32>
    %c0_66 = arith.constant 0 : index
    %c0_67 = arith.constant 0 : index
    %c0_68 = arith.constant 0 : index
    %71 = vector.load %arg9[%c0_66, %c0_67, %c0_68] : memref<1x64x256xf32, #tpu.memory_space<vmem>>, vector<1x64x256xf32>
    %72 = vector.shape_cast %71 : vector<1x64x256xf32> to vector<64x256xf32>
    %73 = vector.shape_cast %70 : vector<64x256xf32> to vector<1x64x256xf32>
    tpu.vector_store %arg9[%c0_66, %c0_67, %c0_68], %73 {strides = array<i32>} : memref<1x64x256xf32, #tpu.memory_space<vmem>>, vector<1x64x256xf32>,
    return
  }
  func.func @transform_0(%arg0: i32) -> (i32, i32, i32) {
    %c0_i32 = arith.constant 0 : i32
    %c0_i32_0 = arith.constant 0 : i32
    %c0_i32_1 = arith.constant 0 : i32
    return %arg0, %c0_i32, %c0_i32_0 : i32, i32, i32
  }
  func.func @transform_1(%arg0: i32) -> (i32, i32) {
    %c0_i32 = arith.constant 0 : i32
    %c0_i32_0 = arith.constant 0 : i32
    %c0_i32_1 = arith.constant 0 : i32
    return %c0_i32, %c0_i32_0 : i32, i32
  }
  func.func @transform_2(%arg0: i32) -> (i32, i32) {
    %c0_i32 = arith.constant 0 : i32
    %c0_i32_0 = arith.constant 0 : i32
    %c0_i32_1 = arith.constant 0 : i32
    return %c0_i32, %c0_i32_0 : i32, i32
  }
  func.func @transform_3(%arg0: i32) -> (i32, i32) {
    %c0_i32 = arith.constant 0 : i32
    %c0_i32_0 = arith.constant 0 : i32
    %c0_i32_1 = arith.constant 0 : i32
    return %c0_i32, %c0_i32_0 : i32, i32
  }
  func.func @transform_4(%arg0: i32) -> (i32, i32) {
    %c0_i32 = arith.constant 0 : i32
    %c0_i32_0 = arith.constant 0 : i32
    %c0_i32_1 = arith.constant 0 : i32
    return %c0_i32, %c0_i32_0 : i32, i32
  }
  func.func @transform_5(%arg0: i32) -> (i32, i32) {
    %c0_i32 = arith.constant 0 : i32
    %c0_i32_0 = arith.constant 0 : i32
    %c0_i32_1 = arith.constant 0 : i32
    return %c0_i32, %c0_i32_0 : i32, i32
  }
  func.func @transform_6(%arg0: i32) -> (i32, i32) {
    %c0_i32 = arith.constant 0 : i32
    %c0_i32_0 = arith.constant 0 : i32
    %c0_i32_1 = arith.constant 0 : i32
    return %c0_i32, %c0_i32_0 : i32, i32
  }
  func.func @transform_7(%arg0: i32) -> (i32, i32, i32) {
    %c0_i32 = arith.constant 0 : i32
    %c0_i32_0 = arith.constant 0 : i32
    %c0_i32_1 = arith.constant 0 : i32
    %c0_i32_2 = arith.constant 0 : i32
    return %c0_i32, %c0_i32_0, %c0_i32_1 : i32, i32, i32
  }
  func.func @transform_8(%arg0: i32) -> (i32, i32, i32) {
    %c0_i32 = arith.constant 0 : i32
    %c0_i32_0 = arith.constant 0 : i32
    %c0_i32_1 = arith.constant 0 : i32
    return %arg0, %c0_i32, %c0_i32_0 : i32, i32, i32
  }
}

</mosaic_0001>

<bundles_post_ra>
// kernel: tpu_custom_call.1
= control target key start
LH: loop header
LB: loop body
LE: loop exit
PB: predicated region body
PF: predicated region fallthrough
CT: control target
= control target key end

     0   :  { %s2761_s0 = inlined_call_operand.hbm [shape: f32[2,32,256], index: 0, kind: input, shape index: {}]   ;;  %s2762_s1 = inlined_call_operand.hbm [shape: f32[16,32], index: 1, kind: input, shape index: {}]   ;;  %s2763_s2 = inlined_call_operand.hbm [shape: f32[16,1], index: 2, kind: input, shape index: {}]   ;;  %s2764_s3 = inlined_call_operand.hbm [shape: f32[16,144], index: 3, kind: input, shape index: {}]   ;;  %s2765_s4 = inlined_call_operand.hbm [shape: f32[16,1], index: 4, kind: input, shape index: {}]   ;;  %s2766_s5 = inlined_call_operand.hbm [shape: f32[64,16], index: 5, kind: input, shape index: {}]   ;;  %s2767_s6 = inlined_call_operand.hbm [shape: f32[64,1], index: 6, kind: input, shape index: {}]   ;;  %s2768_s7 = inlined_call_operand.hbm [shape: f32[2,1,256], index: 7, kind: input, shape index: {}]   ;;  %s2769_s8 = inlined_call_operand.hbm [shape: f32[2,64,256], index: 8, kind: output, shape index: {}]  }
   0x1   :  { %2777 = sst [smem:[#allocation25_spill]] %s2762_s1 }
   0x2   :  { %13 = vsyncpa [#allocation5], 0 }
   0x3   :  { %15 = vsyncpa [#allocation5 + $0x1], 0 }
   0x4   :  { %16 = vsyncpa [#allocation8], 0 }
   0x5   :  { %17 = vsyncpa [#allocation11], 0 }
   0x6   :  { %18 = vsyncpa [#allocation14], 0 }
   0x7   :  { %19 = vsyncpa [#allocation17], 0 }
   0x8   :  { %20 = vsyncpa [#allocation6], 0 }
   0x9   :  { %22 = vsyncpa [#allocation6 + $0x1], 0  ;;  %s2238_s27 = smov 0   ;;  %s2240_s28 = smov 0  }
   0xa   :  { %s2242_s29 = smov 0   ;;  %s2244_s30 = smov 0  }
   0xb LB: > { %s2167_s9 = smov [#allocation7]   ;;  %s2259_s11 = sadd.s32 4294967295, %s2165_s30   ;;  %s2165_s30 = sphi %s2244_s30, %s2805_s30   ;;  %s2161_s29 = sphi %s2242_s29, %s2804_s29   ;;  %s2157_s28 = sphi %s2240_s28, %s2803_s28   ;;  %s2153_s27 = sphi %s2238_s27, %s2802_s27  }
   0xc   : > { %s244_s10 = sshll.u32 %s2167_s9, 4  ;;  %p1512_p0 = scmp.ge.s32.totalorder %s2165_s30, 1  ;;  %s2264_s10 = int_to_ptr.vmem [resolvable:$true] %s244_s10 }
   0xd   : > { %p2772_p1 = scmp.eq.s32.totalorder %s2259_s11, 0  ;;  %p232_p2 = scmp.lt.s32.totalorder %s2165_s30, 3 }
   0xe   : > { %s2168_s13 = smov [#allocation10]   ;;  %s2169_s16 = smov [#allocation13]  }
   0xf   : > { %p2266_p3 = pnand %p1512_p0, %p232_p2  ;;  %s270_s14 = sshll.u32 %s2168_s13, 4  ;;  %s2279_s14 = int_to_ptr.vmem [resolvable:$true] %s270_s14 }
  0x10   : > { %s2281_s17 = sshll.u32 %s2169_s16, 4  ;;  %s2780_s1 = sld [smem:[#allocation25_spill]]  ;;  %s297_s17 = int_to_ptr.vmem [resolvable:$true] %s2281_s17 }
  0x11   : > { %s2778_s12 = scalar_select %p2266_p3, 1, 0 }
  0x12   : > { %p1633_p5 = pneg %p2266_p3 }
  0x14   : > { %p2275_p6 = pnand %p1633_p5, %p2772_p1 }
  0x16   : > { %s1857_s20 = scalar_lea.hbm %s2780_s1, 256  ;;  %p2291_p8 = pneg %p2275_p6 }
  0x17   : > { %p1858_p7 = scmp.ne.s32.totalorder %s2780_s1, %s1857_s20  ;;  %p1864_p11 = scmp.lt.u32.totalorder %s1857_s20, %s2780_s1 }
  0x19   : > { %p1860_p9 = pnand %p2291_p8, %p1858_p7 }
  0x1b   : > { %p1861_p10 = pneg %p1860_p9 }
  0x1d   : > { %p1866_p12 = pnand %p1864_p11, %p1861_p10 }
  0x1f   : > { %1869 = shalt.err (!%p1866_p12)
}
  0x20   : > { %s1870_s26 = scalar_lea.vmem %s2264_s10, 256  ;;  %p1878_p5 = scmp.lt.s32.totalorder %s2264_s10, %s2264_s10 }
  0x21   : > { %p1871_p13 = scmp.ne.s32.totalorder %s2264_s10, %s1870_s26  ;;  %p1879_p4 = scmp.lt.s32.totalorder %s1870_s26, %s1870_s26 }
  0x23   : > { %p1873_p0 = pnand %p1871_p13, %p2291_p8  ;;  %p1880_p7 = por %p1879_p4, %p1878_p5 }
  0x25   : > { %p1874_p2 = pneg %p1873_p0 }
  0x27   : > { %p1881_p9 = pnand %p1880_p7, %p1874_p2 }
  0x29   : > { %1884 = shalt.err (!%p1881_p9)
}
  0x2a   : > { %s2770_s9 = smov 128   ;;  %s2171_s13 = smov 8  }
  0x2b   : > { %1636 = dma.hbm_to_vmem [thread:$0]  (!%p2275_p6), %s2780_s1, 256, %s2264_s10, [#allocation8], %s2770_s9, %s2770_s9, %s2171_s13  }
  0x2c   : > { %s1885_s21 = scalar_lea.hbm %s2764_s3, 512 }
  0x2d   : > { %p1886_p4 = scmp.ne.s32.totalorder %s2764_s3, %s1885_s21  ;;  %p1892_p12 = scmp.lt.u32.totalorder %s1885_s21, %s2764_s3 }
  0x2f   : > { %p1888_p10 = pnand %p1886_p4, %p2291_p8 }
  0x31   : > { %p1889_p11 = pneg %p1888_p10 }
  0x33   : > { %p1894_p13 = pnand %p1892_p12, %p1889_p11 }
  0x35   : > { %1897 = shalt.err (!%p1894_p13)
}
  0x36   : > { %s1898_s10 = scalar_lea.vmem %s2279_s14, 512  ;;  %p1906_p7 = scmp.lt.s32.totalorder %s2279_s14, %s2279_s14 }
  0x37   : > { %p1899_p0 = scmp.ne.s32.totalorder %s2279_s14, %s1898_s10  ;;  %p1907_p9 = scmp.lt.s32.totalorder %s1898_s10, %s1898_s10 }
  0x39   : > { %p1901_p2 = pnand %p1899_p0, %p2291_p8  ;;  %p1908_p4 = por %p1907_p9, %p1906_p7 }
  0x3b   : > { %p1902_p5 = pneg %p1901_p2 }
  0x3d   : > { %p1909_p10 = pnand %p1908_p4, %p1902_p5 }
  0x3f   : > { %1912 = shalt.err (!%p1909_p10)
}
  0x40   : > { %s2774_s16 = smov 256   ;;  %s2775_s18 = smov 16  }
  0x41   : > { %1642 = dma.hbm_to_vmem [thread:$0]  (!%p2275_p6), %s2764_s3, 512, %s2279_s14, [#allocation11], %s2774_s16, %s2774_s16, %s2775_s18  }
  0x42   : > { %s1913_s24 = scalar_lea.hbm %s2766_s5, 1024 }
  0x43   : > { %p1914_p11 = scmp.ne.s32.totalorder %s2766_s5, %s1913_s24  ;;  %p1920_p0 = scmp.lt.u32.totalorder %s1913_s24, %s2766_s5 }
  0x45   : > { %p1916_p12 = pnand %p1914_p11, %p2291_p8 }
  0x47   : > { %p1917_p13 = pneg %p1916_p12 }
  0x49   : > { %p1922_p2 = pnand %p1920_p0, %p1917_p13 }
  0x4b   : > { %1925 = shalt.err (!%p1922_p2)
}
  0x4c   : > { %s1926_s19 = scalar_lea.vmem %s297_s17, 1024  ;;  %p1934_p4 = scmp.lt.s32.totalorder %s297_s17, %s297_s17 }
  0x4d   : > { %p1927_p5 = scmp.ne.s32.totalorder %s297_s17, %s1926_s19  ;;  %p1935_p10 = scmp.lt.s32.totalorder %s1926_s19, %s1926_s19 }
  0x4f   : > { %p1929_p7 = pnand %p1927_p5, %p2291_p8  ;;  %p1936_p1 = por %p1935_p10, %p1934_p4 }
  0x51   : > { %p1930_p9 = pneg %p1929_p7 }
  0x53   : > { %p1937_p3 = pnand %p1936_p1, %p1930_p9 }
  0x55   : > { %1940 = shalt.err (!%p1937_p3)
}
  0x56   : > { %s2782_s14 = smov 128   ;;  %s2174_s21 = smov [#allocation9]  }
  0x57   : > { %1648 = dma.hbm_to_vmem [thread:$0]  (!%p2275_p6), %s2766_s5, 1024, %s297_s17, [#allocation14], %s2782_s14, %s2782_s14, %s2171_s13  }
  0x58   : > { %s257_s22 = sshll.u32 %s2174_s21, 4  ;;  %s2175_s24 = smov [#allocation12]   ;;  %s258_s22 = int_to_ptr.vmem [resolvable:$true] %s257_s22 }
  0x59   : > { %s283_s25 = sshll.u32 %s2175_s24, 4  ;;  %s1941_s19 = scalar_lea.hbm %s2763_s2, 256  ;;  %s284_s25 = int_to_ptr.vmem [resolvable:$true] %s283_s25 }
  0x5a   : > { %p1942_p1 = scmp.ne.s32.totalorder %s2763_s2, %s1941_s19  ;;  %p1948_p12 = scmp.lt.u32.totalorder %s1941_s19, %s2763_s2 }
  0x5c   : > { %p1944_p3 = pnand %p1942_p1, %p2291_p8 }
  0x5e   : > { %p1945_p11 = pneg %p1944_p3 }
  0x60   : > { %p1950_p13 = pnand %p1948_p12, %p1945_p11 }
  0x62   : > { %1953 = shalt.err (!%p1950_p13)
}
  0x63   : > { %s1954_s17 = scalar_lea.vmem %s258_s22, 256  ;;  %p1962_p7 = scmp.lt.s32.totalorder %s258_s22, %s258_s22 }
  0x64   : > { %p1955_p0 = scmp.ne.s32.totalorder %s258_s22, %s1954_s17  ;;  %p1963_p9 = scmp.lt.s32.totalorder %s1954_s17, %s1954_s17 }
  0x66   : > { %p1957_p2 = pnand %p1955_p0, %p2291_p8  ;;  %p1964_p4 = por %p1963_p9, %p1962_p7 }
  0x68   : > { %p1958_p5 = pneg %p1957_p2 }
  0x6a   : > { %p1965_p10 = pnand %p1964_p4, %p1958_p5 }
  0x6c   : > { %1968 = shalt.err (!%p1965_p10)
}
  0x6d   : > { %1639 = dma.hbm_to_vmem [thread:$0]  (!%p2275_p6), %s2763_s2, 256, %s258_s22, [#allocation8], %s2782_s14, %s2782_s14, %s2171_s13  }
  0x6e   : > { %s1969_s21 = scalar_lea.hbm %s2765_s4, 256 }
  0x6f   : > { %p1970_p1 = scmp.ne.s32.totalorder %s2765_s4, %s1969_s21  ;;  %p1976_p12 = scmp.lt.u32.totalorder %s1969_s21, %s2765_s4 }
  0x71   : > { %p1972_p3 = pnand %p1970_p1, %p2291_p8 }
  0x73   : > { %p1973_p11 = pneg %p1972_p3 }
  0x75   : > { %p1978_p13 = pnand %p1976_p12, %p1973_p11 }
  0x77   : > { %1981 = shalt.err (!%p1978_p13)
}
  0x78   : > { %s1982_s9 = scalar_lea.vmem %s284_s25, 256  ;;  %p1990_p7 = scmp.lt.s32.totalorder %s284_s25, %s284_s25 }
  0x79   : > { %p1983_p0 = scmp.ne.s32.totalorder %s284_s25, %s1982_s9  ;;  %p1991_p9 = scmp.lt.s32.totalorder %s1982_s9, %s1982_s9 }
  0x7b   : > { %p1985_p2 = pnand %p1983_p0, %p2291_p8  ;;  %p1992_p4 = por %p1991_p9, %p1990_p7 }
  0x7d   : > { %p1986_p5 = pneg %p1985_p2 }
  0x7f   : > { %p1993_p10 = pnand %p1992_p4, %p1986_p5 }
  0x81   : > { %1996 = shalt.err (!%p1993_p10)
}
  0x82   : > { %1645 = dma.hbm_to_vmem [thread:$0]  (!%p2275_p6), %s2765_s4, 256, %s284_s25, [#allocation11], %s2782_s14, %s2782_s14, %s2171_s13  }
  0x83   : > { %s2176_s1 = smov [#allocation15]   ;;  %s2177_s18 = smov [#allocation16]  }
  0x84   : > { %s309_s16 = sshll.u32 %s2176_s1, 4  ;;  %s322_s20 = sshll.u32 %s2177_s18, 4  ;;  %s310_s16 = int_to_ptr.vmem [resolvable:$true] %s309_s16  ;;  %s323_s20 = int_to_ptr.vmem [resolvable:$true] %s322_s20 }
  0x85   : > { %s1997_s26 = scalar_lea.hbm %s2767_s6, 1024 }
  0x86   : > { %p1998_p1 = scmp.ne.s32.totalorder %s2767_s6, %s1997_s26  ;;  %p2004_p12 = scmp.lt.u32.totalorder %s1997_s26, %s2767_s6 }
  0x88   : > { %p2000_p3 = pnand %p1998_p1, %p2291_p8 }
  0x8a   : > { %p2001_p11 = pneg %p2000_p3 }
  0x8c   : > { %p2006_p13 = pnand %p2004_p12, %p2001_p11 }
  0x8e   : > { %2009 = shalt.err (!%p2006_p13)
}
  0x8f   : > { %s2010_s25 = scalar_lea.vmem %s310_s16, 1024  ;;  %p2018_p7 = scmp.lt.s32.totalorder %s310_s16, %s310_s16 }
  0x90   : > { %p2011_p0 = scmp.ne.s32.totalorder %s310_s16, %s2010_s25  ;;  %p2019_p9 = scmp.lt.s32.totalorder %s2010_s25, %s2010_s25 }
  0x92   : > { %p2013_p2 = pnand %p2011_p0, %p2291_p8  ;;  %p2020_p4 = por %p2019_p9, %p2018_p7 }
  0x94   : > { %p2014_p5 = pneg %p2013_p2 }
  0x96   : > { %p2021_p10 = pnand %p2020_p4, %p2014_p5 }
  0x98   : > { %2024 = shalt.err (!%p2021_p10)
}
  0x99   : > { %1651 = dma.hbm_to_vmem [thread:$0]  (!%p2275_p6), %s2767_s6, 1024, %s310_s16, [#allocation14], %s2782_s14, %s2782_s14, %s2171_s13  }
  0x9a   : > { %s2025_s24 = scalar_lea.hbm %s2768_s7, 64 }
  0x9b   : > { %p2026_p1 = scmp.ne.s32.totalorder %s2768_s7, %s2025_s24  ;;  %p2032_p12 = scmp.lt.u32.totalorder %s2025_s24, %s2768_s7 }
  0x9d   : > { %p2028_p3 = pnand %p2026_p1, %p2291_p8 }
  0x9f   : > { %p2029_p11 = pneg %p2028_p3 }
  0xa1   : > { %p2034_p13 = pnand %p2032_p12, %p2029_p11 }
  0xa3   : > { %2037 = shalt.err (!%p2034_p13)
}
  0xa4   : > { %s2038_s22 = scalar_lea.vmem %s323_s20, 64  ;;  %p2046_p7 = scmp.lt.s32.totalorder %s323_s20, %s323_s20 }
  0xa5   : > { %p2039_p0 = scmp.ne.s32.totalorder %s323_s20, %s2038_s22  ;;  %p2047_p9 = scmp.lt.s32.totalorder %s2038_s22, %s2038_s22 }
  0xa7   : > { %p2041_p2 = pnand %p2039_p0, %p2291_p8  ;;  %p2048_p4 = por %p2047_p9, %p2046_p7 }
  0xa9   : > { %p2042_p5 = pneg %p2041_p2 }
  0xab   : > { %p2049_p10 = pnand %p2048_p4, %p2042_p5 }
  0xad   : > { %2052 = shalt.err (!%p2049_p10)
}
  0xae   : > { %s2178_s13 = smov 32   ;;  %s2179_s23 = smov 2  }
  0xaf   : > { %1654 = dma.hbm_to_vmem [thread:$0]  (!%p2275_p6), %s2768_s7, 64, %s323_s20, [#allocation17], %s2178_s13, %s2178_s13, %s2179_s23  }
  0xb0   : > { %s1511_s25 = sadd.s32 4294967294, %s2165_s30   ;;  %s2446_s17 = sadd.s32 1, %s2165_s30  }
  0xb1   : > { %s35_s1 = sadd.s32 1, %s2161_s29  ;;  %s32_s18 = ssub.s32 %s2165_s30, %s2446_s17 }
  0xb2   : > { %p42_p8 = scmp.ne.s32.totalorder %s2161_s29, %s2157_s28  ;;  %p33_p1 = scmp.eq.s32.totalorder %s32_s18, 0 }
  0xb3   : > { %p43_p3 = scmp.eq.s32.totalorder %s2165_s30, 0  ;;  %p48_p11 = scmp.ne.s32.totalorder %s2157_s28, %s2153_s27 }
  0xb4   : > { %p219_p12 = scmp.eq.s32.totalorder %s2259_s11, 1  ;;  %p2783_p0 = scmp.eq.s32.totalorder %s2259_s11, 0 }
  0xb5   : > { %s2458_s21 = scalar_select %p33_p1, %s2161_s29, %s35_s1  }
  0xb6   : > { %p44_p13 = por %p43_p3, %p42_p8  ;;  %p2462_p2 = por %p2783_p0, %p48_p11 }
  0xb7   : > { %p2466_p6 = por %p219_p12, %p42_p8  ;;  %p225_p5 = scmp.eq.s32.totalorder %s1511_s25, 1 }
  0xb8   : > { %p1670_p7 = scmp.lt.s32.totalorder %s2165_s30, 2  ;;  %s336_s24 = sand.u32 1, %s2161_s29  }
  0xb9   : > { %s2785_s20 = scalar_select %p2466_p6, 1, 0 }
  0xba   : > { %p2472_p9 = por %p225_p5, %p48_p11  ;;  %s1521_s10 = sshll.u32 %s336_s24, 6 }
  0xbb   : > { %s1551_s19 = sshll.u32 %s2165_s30, 10  ;;  %s340_s23 = scalar_lea.vmem [#allocation4], %s1521_s10 }
  0xbc   : > { %s2786_s26 = scalar_select %p2472_p9, 1, 0 }
  0xbd   : > { %s2480_s13 = scalar_lea.hbm %s2761_s0, %s1551_s19  ;;  %s347_s14 = sshll.u32 %s340_s23, 4  ;;  %s2486_s14 = int_to_ptr.vmem [resolvable:$true] %s347_s14 }
  0xbe   : > { %p2482_p4 = pnand %p1670_p7, %p44_p13  ;;  %s2488_s25 = scalar_lea.sflag [#allocation5], %s336_s24 }
  0xbf   : > { %s2053_s1 = scalar_lea.hbm %s2480_s13, 1024  ;;  %s2058_s19 = scalar_lea.hbm %s2761_s0, 2048 }
  0xc0   : > { %p2054_p10 = scmp.ne.s32.totalorder %s2480_s13, %s2053_s1  ;;  %p2055_p8 = pneg %p2482_p4 }
  0xc1   : > { %p2059_p11 = scmp.lt.u32.totalorder %s2480_s13, %s2761_s0  ;;  %p2060_p12 = scmp.lt.u32.totalorder %s2058_s19, %s2053_s1 }
  0xc2   : > { %p2056_p1 = pnand %p2055_p8, %p2054_p10  ;;  %p2062_p0 = scmp.lt.u32.totalorder %s2053_s1, %s2480_s13 }
  0xc3   : > { %p2061_p13 = por %p2060_p12, %p2059_p11 }
  0xc4   : > { %p2057_p3 = pneg %p2056_p1 }
  0xc5   : > { %p2063_p5 = por %p2062_p0, %p2061_p13 }
  0xc7   : > { %p2064_p7 = pnand %p2063_p5, %p2057_p3 }
  0xc9   : > { %2067 = shalt.err (!%p2064_p7)
}
  0xca   : > { %s2068_s24 = scalar_lea.vmem %s2486_s14, 1024  ;;  %s2180_s23 = smov [#allocation4]  }
  0xcb   : > { %p2069_p10 = scmp.ne.s32.totalorder %s2486_s14, %s2068_s24  ;;  %s2073_s18 = sshll.u32 %s2180_s23, 4  ;;  %s2074_s18 = int_to_ptr.vmem [resolvable:$false] %s2073_s18 }
  0xcc   : > { %s2075_s10 = scalar_lea.vmem %s2074_s18, 2048  ;;  %p2076_p6 = scmp.lt.s32.totalorder %s2486_s14, %s2074_s18 }
  0xcd   : > { %p2071_p1 = pnand %p2069_p10, %p2055_p8  ;;  %p2077_p11 = scmp.lt.s32.totalorder %s2075_s10, %s2068_s24 }
  0xcf   : > { %p2072_p9 = pneg %p2071_p1  ;;  %p2078_p12 = por %p2077_p11, %p2076_p6 }
  0xd1   : > { %p2079_p13 = pnand %p2078_p12, %p2072_p9 }
  0xd3   : > { %2082 = shalt.err (!%p2079_p13)
}
  0xd4   : > { %s2788_s1 = smov 16   ;;  %s2789_s19 = smov 256  }
  0xd5   : > { %1658 = dma.hbm_to_vmem [thread:$0]  (!%p2482_p4), %s2480_s13, 1024, %s2486_s14, %s2488_s25, %s2789_s19, %s2789_s19, %s2788_s1  }
  0xd6   : > { %p2790_p8 = scmp.ne.s32.totalorder %s2778_s12, 0 }
  0xd7   : > { %s2522_s9 = sand.u32 (!%p2790_p8), 1, %s2157_s28  }
  0xd8   : > { %359 = sbr.rel (%p2790_p8) target bundleno = 1119 (0x45f), region = 52  ;;  %s1525_s22 = sshll.u32 (!%p2790_p8), %s2522_s9, 6 }
  0xd9   : > { %s362_s24 = scalar_lea.sflag (!%p2790_p8), [#allocation5], %s2522_s9  ;;  %s365_s23 = scalar_lea.vmem (!%p2790_p8), [#allocation4], %s1525_s22 }
  0xdf   : > { %2128 = dma.done.wait (%p2462_p2), %s362_s24, 1024  }
  0xe0   : > { %2130 = vsyncadd (%p2462_p2), %s362_s24, 4294966272  ;;  %p2791_p6 = scmp.eq.s32.totalorder %s2259_s11, 0 }
  0xe2   : > { %2132 = dma.done.wait (%p2791_p6), [#allocation8], 512   ;;  %p2792_p9 = pmov %p2791_p6 }
  0xe3   : > { %p2793_p4 = pmov %p2791_p6 }
  0xe4   : > { %2134 = vsyncadd (%p2792_p9), [#allocation8], 4294966784 }
  0xe5   : > { %2136 = dma.done.wait (%p2793_p4), [#allocation11], 768   ;;  %p2794_p3 = pmov %p2793_p4 }
  0xe7   : > { %2138 = vsyncadd (%p2794_p3), [#allocation11], 4294966528  ;;  %p2795_p0 = pmov %p2794_p3 }
  0xe9   : > { %2140 = dma.done.wait (%p2795_p0), [#allocation14], 2048   ;;  %p2796_p5 = pmov %p2795_p0 }
  0xea   : > { %p2797_p2 = pmov %p2795_p0 }
  0xeb   : > { %2142 = vsyncadd (%p2796_p5), [#allocation14], 4294965248 }
  0xec   : > { %2144 = dma.done.wait (%p2797_p2), [#allocation17], 64   ;;  %p2798_p7 = pmov %p2795_p0 }
  0xed   : > { %v552_v0 = vlaneseq  ;;  %v2181_v1 = vmov 0.0   ;;  %v2182_v2 = vmov 0   ;;  %v429_v4 = vld [vmem:[%s365_s23 + $0x8] sm:$0xff]  ;;  %v431_v5 = vld [vmem:[%s365_s23 + $0x18] sm:$0xff]  ;;  %v428_v6 = vld [vmem:[%s365_s23] sm:$0xff]  ;;  %s2183_s12 = smov 111  }
  0xee   : > { %2146 = vsyncadd (%p2798_p7), [#allocation17], 4294967232  ;;  %519 = vmatprep.mubr.f32.mxu0 %v2181_v1  ;;  %1735 = vset.pattern.permute.xlu0 %v2182_v2  ;;  %v1553_v7 = vpack.c.bf16 %v431_v5, %v429_v4  ;;  %v430_v8 = vld [vmem:[%s365_s23 + $0x10] sm:$0xff]  ;;  %v433_v9 = vld [vmem:[%s365_s23 + $0x28] sm:$0xff]  ;;  %vm448_vm0 = vcmask 261120   ;;  %s2184_s15 = smov 113  }
  0xef   : > { %1856 = vset.pattern.permute.xlu1 %v2182_v2  ;;  %v553_v3 = vshrl.u32 %v552_v0, 7  ;;  %v435_v10 = vld [vmem:[%s365_s23 + $0x38] sm:$0xff]  ;;  %v1555_v12 = vpack.c.bf16 %v430_v8, %v428_v6  ;;  %v432_v14 = vld [vmem:[%s365_s23 + $0x20] sm:$0xff]  ;;  %v434_v15 = vld [vmem:[%s365_s23 + $0x30] sm:$0xff]  ;;  %s2185_s13 = smov 127   ;;  %s2186_s14 = smov 1  }
  0xf0   : > { %v1557_v13 = vpack.c.bf16 %v435_v10, %v433_v9  ;;  %1554 = vmatprep.subr.bf16.mxu0 %v1553_v7  ;;  %v436_v16 = vld [vmem:[#allocation9] sm:$0xff]  ;;  %v1559_v18 = vpack.c.bf16 %v434_v15, %v432_v14  ;;  %v437_v20 = vld [vmem:[#allocation9 + $0x8] sm:$0xff]  ;;  %v426_v24 = vld [vmem:[#allocation7] sm:$0xff]  ;;  %s2187_s16 = smov 15   ;;  %s2188_s25 = smov 17   ;;  %vm664_vm1 = vcmask 924672  }
  0xf1   : > { %v554_v11 = vsub.s32 0, %v553_v3  ;;  %v558_v17 = vsub.s32 1, %v553_v3  ;;  %1556 = vmatpush1.bf16.msra.mxu0 %v1555_v12  ;;  %440 = vperm.xlu0 %1735, %v436_v16   ;;  %v550_v19 = vld [vmem:[#allocation16] sm:$0x3]  ;;  %v650_v22 = vld [vmem:[#allocation16 + $0x2] sm:$0x3] }
  0xf2   : > { %1558 = vmatprep.subr.bf16.mxu0 %v1557_v13  ;;  %v712_v26 = vld [vmem:[#allocation16] sm:$0x3]  ;;  %v427_v28 = vld [vmem:[#allocation7 + $0x8] sm:$0xff]  ;;  %v782_v30 = vld [vmem:[#allocation16 + $0x2] sm:$0x3]  ;;  %s2189_s18 = smov 16  }
  0xf3   : > { %v555_v21 = vrot.slane %v550_v19, %v554_v11  ;;  %v559_v23 = vrot.slane %v550_v19, %v558_v17  ;;  %v655_v25 = vrot.slane %v650_v22, %v554_v11  ;;  %v659_v27 = vrot.slane %v650_v22, %v558_v17  ;;  %v842_v33 = vld [vmem:[#allocation16] sm:$0x3]  ;;  %v939_v36 = vld [vmem:[#allocation16 + $0x2] sm:$0x3]  ;;  %s2190_s10 = smov 112   ;;  %s1533_s1 = sshll.u32 %s2522_s9, 7 }
  0xf4   : > { %v717_v29 = vrot.slane %v712_v26, %v554_v11  ;;  %v721_v31 = vrot.slane %v712_v26, %v558_v17  ;;  %v787_v32 = vrot.slane %v782_v30, %v554_v11  ;;  %v791_v34 = vrot.slane %v782_v30, %v558_v17  ;;  %s2691_s19 = scalar_lea.vmem [#allocation18], %s1533_s1  ;;  %s1552_s22 = sshll.u32 %s2259_s11, 11 }
  0xf5   : > { %560 = vrot.lane.b32.xlu1 %v555_v21, %s2183_s12  ;;  %1560 = vmatpush1.bf16.msra.mxu0 %v1559_v18  ;;  %v847_v35 = vrot.slane %v842_v33, %v554_v11  ;;  %v851_v37 = vrot.slane %v842_v33, %v558_v17  ;;  %v944_v38 = vrot.slane %v939_v36, %v554_v11  ;;  %vm564_vm2 = vcmask 908288   ;;  %s1371_s24 = sshll.u32 %s2691_s19, 4  ;;  %s1358_s11 = scalar_lea.sflag [#allocation6], %s2522_s9  ;;  %s2714_s24 = int_to_ptr.vmem [resolvable:$true] %s1371_s24 }
  0xf6   : > { %445 = vperm.xlu0 %1735, %v437_v20   ;;  %v948_v39 = vrot.slane %v939_v36, %v558_v17  ;;  %vm726_vm3 = vcmask 1039360   ;;  %vm755_vm4 = vcmask 7168   ;;  %vm693_vm5 = vcmask 121856   ;;  %p2799_p1 = scmp.ne.s32.totalorder %s2785_s20, 0 }
  0xf7   : > { %vm593_vm6 = vcmask 138240   ;;  %vm630_vm7 = vcmask 130048   ;;  %vm920_vm8 = vcmask 916480  }
  0xf8   : > { %1534 = vmatmul.mubr.msk.f32.vlgmr.msra.gmra.mrb[0].mxu0 %vm448_vm0, %v426_v24 }
  0xf9   : > { %562 = vrot.lane.b32.xlu1 %v559_v23, %s2183_s12  ;;  %525 = vmatprep.mubr.f32.mxu0 %v2181_v1 }
  0xfa   : > { %660 = vrot.lane.b32.xlu0 %v655_v25, %s2184_s15 }
  0xfc   : > { %1535 = vmatmul.mubr.msk.f32.gmra.mrb[2].mxu0 %vm448_vm0, %v427_v28 }
  0xfd   : > { %662 = vrot.lane.b32.xlu1 %v659_v27, %s2184_s15  ;;  %1276 = vmatprep.mubr.f32.mxu0 %v2181_v1 }
  0xfe   : > { %722 = vrot.lane.b32.xlu0 %v717_v29, %s2185_s13 }
 0x101   : > { %724 = vrot.lane.b32.xlu1 %v721_v31, %s2185_s13 }
 0x102   : > { %792 = vrot.lane.b32.xlu0 %v787_v32, %s2186_s14 }
 0x105   : > { %794 = vrot.lane.b32.xlu1 %v791_v34, %s2186_s14 }
 0x106   : > { %852 = vrot.lane.b32.xlu0 %v847_v35, %s2187_s16 }
 0x109   : > { %854 = vrot.lane.b32.xlu1 %v851_v37, %s2187_s16 }
 0x10a   : > { %949 = vrot.lane.b32.xlu0 %v944_v38, %s2188_s25 }
 0x10d   : > { %951 = vrot.lane.b32.xlu1 %v948_v39, %s2188_s25 }
 0x111   : > { %1737 = vrot.lane.b32.xlu1 %v2181_v1, %s2189_s18 }
 0x167   : > { %v561_v40 = vpop.permute.xlu1 %560 }
 0x168   : > { %v569_v41 = vmul.f32 0.0, %v561_v40 }
 0x16a   : > { %v1741_v42 = vpack.i.bf16 %v569_v41, %v569_v41 }
 0x16b   : > { %v563_v48 = vpop.permute.xlu1 %562 }
 0x16c   : > { %1742 = vrot.lane.b32.xlu0 %v1741_v42, %s2188_s25  ;;  %v565_v59 = vsel %vm564_vm2, %v561_v40, %v563_v48 }
 0x16f   : > { %v663_v50 = vpop.permute.xlu1 %662 }
 0x170   : > { %v441_v43 = vpop.permute.xlu0 %440 }
 0x173   : > { %v725_v57 = vpop.permute.xlu1 %724 }
 0x175   : > { %v446_v44 = vpop.permute.xlu0 %445 }
 0x177   : > { %v795_v23 = vpop.permute.xlu1 %794 }
 0x178   : > { %v802_v34 = vmul.f32 0.0, %v795_v23 }
 0x179   : > { %v661_v45 = vpop.permute.xlu0 %660 }
 0x17a   : > { %v669_v46 = vmul.f32 0.0, %v661_v45  ;;  %v665_v55 = vsel %vm664_vm1, %v661_v45, %v663_v50 }
 0x17c   : > { %v1746_v47 = vpack.i.bf16 %v669_v46, %v669_v46 }
 0x17d   : > { %v2565_v49 = vpop.permute.xlu0 %722 }
 0x17e   : > { %1747 = vrot.lane.b32.xlu0 %v1746_v47, %s2187_s16  ;;  %v727_v60 = vsel %vm726_vm3, %v2565_v49, %v725_v57 }
 0x181   : > { %v793_v52 = vpop.permute.xlu0 %792 }
 0x182   : > { %v796_v28 = vsel %vm755_vm4, %v793_v52, %v795_v23 }
 0x185   : > { %v853_v7 = vpop.permute.xlu0 %852 }
 0x189   : > { %v950_v29 = vpop.permute.xlu0 %949 }
 0x1cb   : > { %v521_v51 = vpop.f32.mrb[0].mxu0 }
 0x1cc   : > { %v522_v53 = vadd.f32 %v521_v51, %v441_v43  ;;  %v523_v54 = vpop.f32.mrb[1].mxu0 }
 0x1cd   : > { %v524_v56 = vadd.f32 %v523_v54, %v441_v43  ;;  %v731_v43 = vmul.f32 0.0, %v2565_v49 }
 0x1ce   : > { %v2568_v58 = vmax.f32 %v522_v53, 0.0 }
 0x1cf   : > { %v2573_v61 = vmax.f32 %v524_v56, 0.0  ;;  %v527_v62 = vpop.f32.mrb[2].mxu0  ;;  %v1786_v47 = vpack.i.bf16 %v731_v43, %v731_v43 }
 0x1d0   : > { %v528_v63 = vadd.f32 %v527_v62, %v446_v44  ;;  %v529_v0 = vpop.f32.mrb[3].mxu0  ;;  %v570_v2 = vmul.f32 %v565_v59, %v2568_v58  ;;  %v670_v3 = vmul.f32 %v665_v55, %v2568_v58  ;;  %v732_v10 = vmul.f32 %v727_v60, %v2568_v58 }
 0x1d1   : > { %v530_v4 = vadd.f32 %v529_v0, %v446_v44  ;;  %v1751_v5 = vpack.i.bf16 %v2573_v61, %v2568_v58  ;;  %v571_v6 = vmul.f32 %v563_v48, %v2573_v61  ;;  %v671_v9 = vmul.f32 %v663_v50, %v2573_v61  ;;  %v855_v44 = vpop.permute.xlu1 %854  ;;  %v994_v0 = vld [vmem:[#allocation10 + $0x8] sm:$0xff] }
 0x1d2   : > { %v2580_v8 = vmax.f32 %v528_v63, 0.0  ;;  %v733_v11 = vmul.f32 %v725_v57, %v2573_v61  ;;  %v800_v26 = vmul.f32 %v793_v52, %v2568_v58  ;;  %v860_v31 = vmul.f32 %v853_v7, %v2568_v58  ;;  %1536 = vmatprep.mubr.msk.f32.mxu1 %vm630_vm7, %v994_v0 }
 0x1d3   : > { %v2585_v12 = vmax.f32 %v530_v4, 0.0  ;;  %1752 = vrot.lane.b32.xlu1 %v1751_v5, %s2189_s18  ;;  %v1756_v13 = vpack.i.bf16 %v571_v6, %v570_v2  ;;  %v1761_v15 = vpack.i.bf16 %v671_v9, %v670_v3  ;;  %v957_v37 = vmul.f32 %v950_v29, %v2568_v58  ;;  %v1033_v4 = vld [vmem:[#allocation12] sm:$0xff]  ;;  %v1140_v5 = vld [vmem:[#allocation15] sm:$0xff] }
 0x1d4   : > { %v573_v14 = vmul.f32 %v565_v59, %v2580_v8  ;;  %v1776_v16 = vpack.i.bf16 %v733_v11, %v732_v10  ;;  %v673_v17 = vmul.f32 %v665_v55, %v2580_v8  ;;  %v735_v21 = vmul.f32 %v727_v60, %v2580_v8  ;;  %v1142_v6 = vld [vmem:[#allocation15 + $0x10] sm:$0xff]  ;;  %v1034_v10 = vld [vmem:[#allocation12 + $0x8] sm:$0xff]  ;;  %v1141_v11 = vld [vmem:[#allocation15 + $0x8] sm:$0xff] }
 0x1d5   : > { %1757 = vrot.lane.b32.xlu0 %v1756_v13, %s2188_s25  ;;  %v574_v18 = vmul.f32 %v563_v48, %v2585_v12  ;;  %v1766_v19 = vpack.i.bf16 %v2585_v12, %v2580_v8  ;;  %v674_v20 = vmul.f32 %v663_v50, %v2585_v12  ;;  %v736_v22 = vmul.f32 %v725_v57, %v2585_v12  ;;  %v952_v55 = vpop.permute.xlu1 %951  ;;  %v1146_v9 = vld [vmem:[#allocation15 + $0x30] sm:$0xff]  ;;  %v1143_v13 = vld [vmem:[#allocation15 + $0x18] sm:$0xff] }
 0x1d6   : > { %v803_v27 = vmul.f32 %v793_v52, %v2580_v8  ;;  %v863_v32 = vmul.f32 %v853_v7, %v2580_v8  ;;  %v1836_v36 = vpack.i.bf16 %v2580_v8, %v2568_v58  ;;  %v801_v38 = vmul.f32 %v796_v28, %v2573_v61 }
 0x1d7   : > { %v1771_v24 = vpack.i.bf16 %v574_v18, %v573_v14  ;;  %v1781_v25 = vpack.i.bf16 %v674_v20, %v673_v17  ;;  %v1796_v30 = vpack.i.bf16 %v736_v22, %v735_v21  ;;  %v960_v39 = vmul.f32 %v950_v29, %v2580_v8  ;;  %v1145_v14 = vld [vmem:[#allocation15 + $0x28] sm:$0xff] }
 0x1d8   : > { %v1801_v33 = vpack.i.bf16 %v803_v27, %v800_v26  ;;  %v1816_v35 = vpack.i.bf16 %v863_v32, %v860_v31  ;;  %v1577_v40 = vpack.c.bf16 %v2585_v12, %v2573_v61  ;;  %v1579_v41 = vpack.c.bf16 %v2580_v8, %v2568_v58 }
 0x1d9   : > { %1772 = vrot.lane.b32.xlu1 %v1771_v24, %s2188_s25  ;;  %1762 = vrot.lane.b32.xlu0 %v1761_v15, %s2187_s16  ;;  %v1851_v42 = vpack.i.bf16 %v960_v39, %v957_v37  ;;  %v1791_v45 = vpack.i.bf16 %v802_v34, %v801_v38  ;;  %v856_v46 = vsel %vm693_vm5, %v853_v7, %v855_v44  ;;  %v862_v48 = vmul.f32 0.0, %v855_v44  ;;  %v1144_v7 = vld [vmem:[#allocation15 + $0x20] sm:$0xff]  ;;  %v1147_v15 = vld [vmem:[#allocation15 + $0x38] sm:$0xff]  ;;  %v1738_v17 = vpop.permute.xlu1 %1737 }
 0x1da   : > { %v861_v50 = vmul.f32 %v856_v46, %v2573_v61  ;;  %v804_v52 = vmul.f32 %v796_v28, %v2585_v12  ;;  %v1821_v53 = vpack.i.bf16 %v2181_v1, %v2573_v61  ;;  %v864_v54 = vmul.f32 %v856_v46, %v2585_v12 }
 0x1db   : > { %v953_v57 = vsel %vm593_vm6, %v950_v29, %v952_v55  ;;  %v959_v59 = vmul.f32 0.0, %v952_v55  ;;  %v1826_v62 = vpack.i.bf16 %v2181_v1, %v2585_v12  ;;  %v1740_v39 = vunpack.i.h.bf16 %v1738_v17 }
 0x1dc   : > { %v1806_v51 = vpack.i.bf16 %v862_v48, %v861_v50  ;;  %v1811_v49 = vpack.i.bf16 %v802_v34, %v804_v52  ;;  %v1831_v56 = vpack.i.bf16 %v862_v48, %v864_v54  ;;  %v958_v60 = vmul.f32 %v953_v57, %v2573_v61 }
 0x1dd   : > { %1777 = vrot.lane.b32.xlu1 %v1776_v16, %s2186_s14  ;;  %1767 = vrot.lane.b32.xlu0 %v1766_v19, %s2189_s18  ;;  %v961_v63 = vmul.f32 %v953_v57, %v2585_v12 }
 0x1de   : > { %v1841_v2 = vpack.i.bf16 %v959_v59, %v958_v60  ;;  %v1743_v16 = vpop.permute.xlu0 %1742 }
 0x1df   : > { %v1846_v3 = vpack.i.bf16 %v959_v59, %v961_v63  ;;  %v1744_v26 = vunpack.i.l.bf16 %v1743_v16 }
 0x1e1   : > { %1782 = vrot.lane.b32.xlu1 %v1781_v25, %s2187_s16  ;;  %1792 = vrot.lane.b32.xlu0 %v1791_v45, %s2185_s13  ;;  %v1745_v25 = vunpack.i.h.bf16 %v1743_v16 }
 0x1e5   : > { %1787 = vrot.lane.b32.xlu1 %v1786_v47, %s2186_s14  ;;  %1797 = vrot.lane.b32.xlu0 %v1796_v30, %s2186_s14  ;;  %s2191_s14 = smov [#allocation18]  }
 0x1e6   : > { %s2087_s16 = sshll.u32 %s2191_s14, 4  ;;  %s2088_s16 = int_to_ptr.vmem [resolvable:$false] %s2087_s16 }
 0x1e7   : > { %s2089_s25 = scalar_lea.vmem %s2088_s16, 4096  ;;  %p2090_p13 = scmp.lt.s32.totalorder %s2714_s24, %s2088_s16 }
 0x1e9   : > { %1807 = vrot.lane.b32.xlu1 %v1806_v51, %s2184_s15  ;;  %1802 = vrot.lane.b32.xlu0 %v1801_v33, %s2185_s13 }
 0x1ed   : > { %1812 = vrot.lane.b32.xlu1 %v1811_v49, %s2185_s13  ;;  %1822 = vrot.lane.b32.xlu0 %v1821_v53, %s2190_s10  ;;  %s2083_s13 = scalar_lea.vmem %s2714_s24, 2048 }
 0x1ee   : > { %p2084_p10 = scmp.ne.s32.totalorder %s2714_s24, %s2083_s13  ;;  %p2091_p8 = scmp.lt.s32.totalorder %s2089_s25, %s2083_s13 }
 0x1f0   : > { %v1748_v18 = vpop.permute.xlu0 %1747  ;;  %p2085_p11 = pnand %p2084_p10, %p2799_p1  ;;  %p2092_p6 = por %p2091_p8, %p2090_p13 }
 0x1f1   : > { %1817 = vrot.lane.b32.xlu1 %v1816_v35, %s2184_s15  ;;  %1832 = vrot.lane.b32.xlu0 %v1831_v56, %s2184_s15  ;;  %v1749_v52 = vunpack.i.l.bf16 %v1748_v18  ;;  %v1750_v56 = vunpack.i.h.bf16 %v1748_v18  ;;  %s2712_s15 = scalar_lea.hbm %s2769_s8, %s1552_s22 }
 0x1f2   : > { %p2086_p12 = pneg %p2085_p11 }
 0x1f4   : > { %p2093_p9 = pnand %p2092_p6, %p2086_p12 }
 0x1f5   : > { %1827 = vrot.lane.b32.xlu1 %v1826_v62, %s2190_s10  ;;  %1837 = vrot.lane.b32.xlu0 %v1836_v36, %s2190_s10 }
 0x1f9   : > { %1842 = vrot.lane.b32.xlu1 %v1841_v2, %s2183_s12  ;;  %1847 = vrot.lane.b32.xlu0 %v1846_v3, %s2183_s12 }
 0x1fd   : > { %1852 = vrot.lane.b32.xlu1 %v1851_v42, %s2183_s12  ;;  %1037 = vperm.xlu0 %1735, %v1033_v4   ;;  %v1739_v42 = vunpack.i.l.bf16 %v1738_v17 }
 0x201   : > { %1150 = vperm.xlu0 %1735, %v1140_v5   ;;  %1042 = vperm.xlu1 %1856, %v1034_v10  }
 0x205   : > { %1160 = vperm.xlu0 %1735, %v1142_v6   ;;  %1155 = vperm.xlu1 %1856, %v1141_v11  }
 0x209   : > { %1170 = vperm.xlu0 %1735, %v1144_v7   ;;  %1165 = vperm.xlu1 %1856, %v1143_v13  }
 0x20d   : > { %1180 = vperm.xlu0 %1735, %v1146_v9   ;;  %1175 = vperm.xlu1 %1856, %v1145_v14  }
 0x211   : > { %1185 = vperm.xlu1 %1856, %v1147_v15  }
 0x245   : > { %v1753_v19 = vpop.permute.xlu1 %1752 }
 0x246   : > { %v1755_v29 = vunpack.i.h.bf16 %v1753_v19  ;;  %v1754_v30 = vunpack.i.l.bf16 %v1753_v19 }
 0x247   : > { %v1758_v20 = vpop.permute.xlu0 %1757 }
 0x248   : > { %v1760_v21 = vunpack.i.h.bf16 %v1758_v20  ;;  %v1759_v22 = vunpack.i.l.bf16 %v1758_v20  ;;  %v632_v47 = vsel %vm630_vm7, %v1754_v30, %v1755_v29  ;;  %v631_v50 = vsel %vm630_vm7, %v1739_v42, %v1754_v30 }
 0x24a   : > { %v595_v31 = vsel %vm593_vm6, %v1759_v22, %v1760_v21  ;;  %v594_v33 = vsel %vm593_vm6, %v1744_v26, %v1759_v22 }
 0x24b   : > { %v1773_v23 = vpop.permute.xlu1 %1772  ;;  %v1763_v24 = vpop.permute.xlu0 %1762 }
 0x24c   : > { %v1775_v27 = vunpack.i.h.bf16 %v1773_v23  ;;  %v1774_v28 = vunpack.i.l.bf16 %v1773_v23  ;;  %v1765_v45 = vunpack.i.h.bf16 %v1763_v24  ;;  %v1764_v46 = vunpack.i.l.bf16 %v1763_v24 }
 0x24e   : > { %v597_v32 = vsel %vm593_vm6, %v1774_v28, %v1775_v27  ;;  %v596_v34 = vsel %vm593_vm6, %v1745_v25, %v1774_v28  ;;  %v695_v60 = vsel %vm693_vm5, %v1764_v46, %v1765_v45  ;;  %v694_v62 = vsel %vm693_vm5, %v1749_v52, %v1764_v46 }
 0x24f   : > { %v1778_v35 = vpop.permute.xlu1 %1777  ;;  %v1768_v36 = vpop.permute.xlu0 %1767  ;;  %v1561_v37 = vpack.c.bf16 %v597_v32, %v595_v31  ;;  %v1563_v38 = vpack.c.bf16 %v596_v34, %v594_v33 }
 0x250   : > { %v1770_v43 = vunpack.i.h.bf16 %v1768_v36  ;;  %v1769_v44 = vunpack.i.l.bf16 %v1768_v36  ;;  %v1780_v63 = vunpack.i.h.bf16 %v1778_v35  ;;  %v1779_v0 = vunpack.i.l.bf16 %v1778_v35 }
 0x251   : > { %1562 = vmatprep.subr.bf16.mxu1 %v1561_v37 }
 0x252   : > { %1564 = vmatpush1.bf16.msra.mxu1 %v1563_v38  ;;  %v634_v48 = vsel %vm630_vm7, %v1769_v44, %v1770_v43  ;;  %v633_v51 = vsel %vm630_vm7, %v1740_v39, %v1769_v44  ;;  %v757_v14 = vsel %vm755_vm4, %v1779_v0, %v1780_v63 }
 0x253   : > { %v1783_v49 = vpop.permute.xlu1 %1782  ;;  %v1793_v53 = vpop.permute.xlu0 %1792  ;;  %v1565_v54 = vpack.c.bf16 %v634_v48, %v632_v47  ;;  %v1567_v55 = vpack.c.bf16 %v633_v51, %v631_v50 }
 0x254   : > { %v1785_v57 = vunpack.i.h.bf16 %v1783_v49  ;;  %v1784_v59 = vunpack.i.l.bf16 %v1783_v49  ;;  %v1795_v22 = vunpack.i.h.bf16 %v1793_v53  ;;  %v1794_v23 = vunpack.i.l.bf16 %v1793_v53 }
 0x255   : > { %1566 = vmatprep.subr.bf16.mxu1 %v1565_v54 }
 0x256   : > { %1568 = vmatpush1.bf16.msra.mxu1 %v1567_v55  ;;  %v697_v2 = vsel %vm693_vm5, %v1784_v59, %v1785_v57  ;;  %v696_v3 = vsel %vm693_vm5, %v1750_v56, %v1784_v59  ;;  %v825_v32 = vsel %vm726_vm3, %v1794_v23, %v1795_v22 }
 0x257   : > { %v1788_v4 = vpop.permute.xlu1 %1787  ;;  %v1798_v5 = vpop.permute.xlu0 %1797  ;;  %v1569_v6 = vpack.c.bf16 %v697_v2, %v695_v60  ;;  %v1571_v7 = vpack.c.bf16 %v696_v3, %v694_v62 }
 0x258   : > { %v1790_v9 = vunpack.i.h.bf16 %v1788_v4  ;;  %v1789_v10 = vunpack.i.l.bf16 %v1788_v4  ;;  %v1800_v11 = vunpack.i.h.bf16 %v1798_v5  ;;  %v1799_v13 = vunpack.i.l.bf16 %v1798_v5 }
 0x259   : > { %1570 = vmatprep.subr.bf16.mxu1 %v1569_v6 }
 0x25a   : > { %1572 = vmatpush1.bf16.msra.mxu1 %v1571_v7  ;;  %v759_v15 = vsel %vm755_vm4, %v1799_v13, %v1800_v11  ;;  %v756_v16 = vsel %vm755_vm4, %v1789_v10, %v1779_v0  ;;  %v758_v17 = vsel %vm755_vm4, %v1790_v9, %v1799_v13 }
 0x25b   : > { %v1808_v18 = vpop.permute.xlu1 %1807  ;;  %v1803_v19 = vpop.permute.xlu0 %1802  ;;  %v1573_v20 = vpack.c.bf16 %v759_v15, %v757_v14  ;;  %v1575_v21 = vpack.c.bf16 %v758_v17, %v756_v16  ;;  %v993_v16 = vld [vmem:[#allocation10] sm:$0xff]  ;;  %v996_v17 = vld [vmem:[#allocation10 + $0x18] sm:$0xff] }
 0x25c   : > { %v1804_v24 = vunpack.i.l.bf16 %v1803_v19  ;;  %v1805_v27 = vunpack.i.h.bf16 %v1803_v19  ;;  %v1810_v30 = vunpack.i.h.bf16 %v1808_v18  ;;  %v1809_v31 = vunpack.i.l.bf16 %v1808_v18  ;;  %v995_v18 = vld [vmem:[#allocation10 + $0x10] sm:$0xff] }
 0x25d   : > { %1574 = vmatprep.subr.bf16.mxu1 %v1573_v20 }
 0x25e   : > { %1576 = vmatpush1.bf16.msra.mxu1 %v1575_v21  ;;  %v824_v34 = vsel %vm726_vm3, %v1804_v24, %v1794_v23  ;;  %v885_v58 = vsel %vm664_vm1, %v1809_v31, %v1810_v30 }
 0x25f   : > { %v1813_v25 = vpop.permute.xlu1 %1812  ;;  %v1823_v26 = vpop.permute.xlu0 %1822  ;;  %1578 = vmatprep.subr.bf16.mxu1 %v1577_v40 }
 0x260   : > { %v1815_v28 = vunpack.i.h.bf16 %v1813_v25  ;;  %v1814_v29 = vunpack.i.l.bf16 %v1813_v25  ;;  %v1825_v43 = vunpack.i.h.bf16 %v1823_v26  ;;  %v1824_v8 = vunpack.i.l.bf16 %v1823_v26 }
 0x262   : > { %1580 = vmatpush1.bf16.msra.mxu1 %v1579_v41  ;;  %v827_v33 = vsel %vm726_vm3, %v1814_v29, %v1815_v28  ;;  %v826_v35 = vsel %vm726_vm3, %v1805_v27, %v1814_v29  ;;  %v922_v54 = vsel %vm920_vm8, %v1824_v8, %v1825_v43 }
 0x263   : > { %v1818_v36 = vpop.permute.xlu1 %1817  ;;  %v1833_v61 = vpop.permute.xlu0 %1832  ;;  %v1581_v12 = vpack.c.bf16 %v827_v33, %v825_v32  ;;  %v1583_v40 = vpack.c.bf16 %v826_v35, %v824_v34  ;;  %v1132_v35 = vld [vmem:[#allocation13] sm:$0xff] }
 0x264   : > { %v1820_v37 = vunpack.i.h.bf16 %v1818_v36  ;;  %v1819_v38 = vunpack.i.l.bf16 %v1818_v36  ;;  %v1835_v39 = vunpack.i.h.bf16 %v1833_v61  ;;  %v1834_v42 = vunpack.i.l.bf16 %v1833_v61  ;;  %v1133_v36 = vld [vmem:[#allocation13 + $0x8] sm:$0xff]  ;;  %v1134_v61 = vld [vmem:[#allocation13 + $0x10] sm:$0xff] }
 0x265   : > { %1582 = vmatprep.subr.bf16.mxu1 %v1581_v12  ;;  %v1135_v12 = vld [vmem:[#allocation13 + $0x18] sm:$0xff] }
 0x266   : > { %1584 = vmatpush1.bf16.msra.mxu1 %v1583_v40  ;;  %v887_v41 = vsel %vm664_vm1, %v1834_v42, %v1835_v39  ;;  %v884_v44 = vsel %vm664_vm1, %v1819_v38, %v1809_v31  ;;  %v886_v45 = vsel %vm664_vm1, %v1820_v37, %v1834_v42  ;;  %v1136_v40 = vld [vmem:[#allocation13 + $0x20] sm:$0xff]  ;;  %v1137_v37 = vld [vmem:[#allocation13 + $0x28] sm:$0xff]  ;;  %v1138_v38 = vld [vmem:[#allocation13 + $0x30] sm:$0xff] }
 0x267   : > { %v1828_v46 = vpop.permute.xlu1 %1827  ;;  %v1838_v47 = vpop.permute.xlu0 %1837  ;;  %v1585_v48 = vpack.c.bf16 %v887_v41, %v885_v58  ;;  %v1587_v50 = vpack.c.bf16 %v886_v45, %v884_v44  ;;  %v1139_v39 = vld [vmem:[#allocation13 + $0x38] sm:$0xff] }
 0x268   : > { %v1830_v51 = vunpack.i.h.bf16 %v1828_v46  ;;  %v1829_v52 = vunpack.i.l.bf16 %v1828_v46  ;;  %v1840_v49 = vunpack.i.h.bf16 %v1838_v47  ;;  %v1839_v53 = vunpack.i.l.bf16 %v1838_v47 }
 0x269   : > { %1586 = vmatprep.subr.bf16.mxu1 %v1585_v48 }
 0x26a   : > { %1588 = vmatpush1.bf16.msra.mxu1 %v1587_v50  ;;  %v924_v55 = vsel %vm920_vm8, %v1829_v52, %v1830_v51  ;;  %v921_v56 = vsel %vm920_vm8, %v1839_v53, %v1824_v8  ;;  %v923_v57 = vsel %vm920_vm8, %v1840_v49, %v1829_v52 }
 0x26b   : > { %v1843_v59 = vpop.permute.xlu1 %1842  ;;  %v1848_v60 = vpop.permute.xlu0 %1847  ;;  %v1589_v62 = vpack.c.bf16 %v924_v55, %v922_v54  ;;  %v1591_v63 = vpack.c.bf16 %v923_v57, %v921_v56 }
 0x26c   : > { %v1845_v0 = vunpack.i.h.bf16 %v1843_v59  ;;  %v1844_v2 = vunpack.i.l.bf16 %v1843_v59  ;;  %v1850_v3 = vunpack.i.h.bf16 %v1848_v60  ;;  %v1849_v4 = vunpack.i.l.bf16 %v1848_v60 }
 0x26d   : > { %1590 = vmatprep.subr.bf16.mxu1 %v1589_v62 }
 0x26e   : > { %1592 = vmatpush1.bf16.msra.mxu1 %v1591_v63  ;;  %v982_v5 = vsel %vm564_vm2, %v1844_v2, %v1845_v0  ;;  %v984_v6 = vsel %vm564_vm2, %v1849_v4, %v1850_v3 }
 0x26f   : > { %v1853_v7 = vpop.permute.xlu1 %1852  ;;  %v1593_v9 = vpack.c.bf16 %v984_v6, %v982_v5 }
 0x270   : > { %v1855_v10 = vunpack.i.h.bf16 %v1853_v7  ;;  %v1854_v11 = vunpack.i.l.bf16 %v1853_v7 }
 0x271   : > { %1594 = vmatprep.subr.bf16.mxu1 %v1593_v9 }
 0x272   : > { %v981_v13 = vsel %vm564_vm2, %v1854_v11, %v1844_v2  ;;  %v983_v14 = vsel %vm564_vm2, %v1855_v10, %v1849_v4 }
 0x273   : > { %v1595_v15 = vpack.c.bf16 %v983_v14, %v981_v13 }
 0x275   : > { %1596 = vmatpush1.bf16.msra.mxu1 %v1595_v15 }
 0x278   : > { %1116 = vmatmul.mubr.f32.vlgmr.msra.gmra.mrb[0].mxu1 %v993_v16 }
 0x279   : > { %1537 = vmatprep.mubr.msk.f32.mxu1 %vm630_vm7, %v996_v17 }
 0x27c   : > { %1122 = vmatmul.mubr.f32.gmra.mrb[2].mxu1 %v995_v18  ;;  %v1038_v21 = vpop.permute.xlu0 %1037 }
 0x280   : > { %v1043_v23 = vpop.permute.xlu1 %1042  ;;  %v1151_v42 = vpop.permute.xlu0 %1150 }
 0x284   : > { %v1156_v45 = vpop.permute.xlu1 %1155  ;;  %v1161_v52 = vpop.permute.xlu0 %1160 }
 0x288   : > { %v1166_v59 = vpop.permute.xlu1 %1165  ;;  %v1171_v4 = vpop.permute.xlu0 %1170 }
 0x28c   : > { %v1176_v13 = vpop.permute.xlu1 %1175 }
 0x34b   : > { %v1117_v19 = vpop.f32.mrb[0].mxu1 }
 0x34c   : > { %v1119_v20 = vpop.f32.mrb[1].mxu1  ;;  %v1118_v22 = vadd.f32 %v1117_v19, %v1038_v21 }
 0x34d   : > { %v1120_v24 = vadd.f32 %v1119_v20, %v1038_v21  ;;  %v1181_v20 = vpop.permute.xlu0 %1180 }
 0x34e   : > { %v1128_v29 = vmax.f32 %v1118_v22, 0.0 }
 0x34f   : > { %v1123_v25 = vpop.f32.mrb[2].mxu1  ;;  %v1129_v31 = vmax.f32 %v1120_v24, 0.0 }
 0x350   : > { %v1124_v26 = vadd.f32 %v1123_v25, %v1043_v23  ;;  %v1125_v27 = vpop.f32.mrb[3].mxu1 }
 0x351   : > { %v1126_v28 = vadd.f32 %v1125_v27, %v1043_v23  ;;  %v1186_v27 = vpop.permute.xlu1 %1185 }
 0x352   : > { %v1130_v30 = vmax.f32 %v1124_v26, 0.0 }
 0x353   : > { %v1131_v32 = vmax.f32 %v1126_v28, 0.0 }
 0x354   : > { %v1599_v33 = vpack.c.bf16 %v1130_v30, %v1128_v29 }
 0x355   : > { %v1597_v34 = vpack.c.bf16 %v1131_v32, %v1129_v31 }
 0x357   : > { %1598 = vmatprep.subr.bf16.mxu0 %v1597_v34 }
 0x358   : > { %1600 = vmatpush1.bf16.msra.mxu0 %v1599_v33 }
 0x35b   : > { %1538 = vmatmul.mubr.msk.f32.vlgmr.msra.gmra.mrb[4].mxu0 %vm630_vm7, %v1132_v35 }
 0x35c   : > { %1282 = vmatprep.mubr.f32.mxu0 %v2181_v1 }
 0x35f   : > { %1539 = vmatmul.mubr.msk.f32.gmra.mrb[6].mxu0 %vm630_vm7, %v1133_v36 }
 0x360   : > { %1288 = vmatprep.mubr.f32.mxu0 %v2181_v1 }
 0x363   : > { %1540 = vmatmul.mubr.msk.f32.gmra.mrb[8].mxu0 %vm630_vm7, %v1134_v61 }
 0x364   : > { %1294 = vmatprep.mubr.f32.mxu0 %v2181_v1 }
 0x367   : > { %1541 = vmatmul.mubr.msk.f32.gmra.mrb[10].mxu0 %vm630_vm7, %v1135_v12 }
 0x368   : > { %1300 = vmatprep.mubr.f32.mxu0 %v2181_v1 }
 0x36b   : > { %1542 = vmatmul.mubr.msk.f32.gmra.mrb[12].mxu0 %vm630_vm7, %v1136_v40 }
 0x36c   : > { %1306 = vmatprep.mubr.f32.mxu0 %v2181_v1 }
 0x36f   : > { %1543 = vmatmul.mubr.msk.f32.gmra.mrb[14].mxu0 %vm630_vm7, %v1137_v37 }
 0x370   : > { %1312 = vmatprep.mubr.f32.mxu0 %v2181_v1 }
 0x373   : > { %1544 = vmatmul.mubr.msk.f32.gmra.mrb[16].mxu0 %vm630_vm7, %v1138_v38 }
 0x374   : > { %1318 = vmatprep.mubr.f32.mxu0 %v2181_v1 }
 0x377   : > { %1545 = vmatmul.mubr.msk.f32.gmra.mrb[18].mxu0 %vm630_vm7, %v1139_v39 }
 0x42e   : > { %v1278_v43 = vpop.f32.mrb[4].mxu0 }
 0x42f   : > { %v1279_v58 = vadd.f32 %v1278_v43, %v1151_v42  ;;  %v1280_v8 = vpop.f32.mrb[5].mxu0 }
 0x430   : > { %v1281_v41 = vadd.f32 %v1280_v8, %v1151_v42 }
 0x431   : > { %v1325_v44 = vmax.f32 %v1279_v58, 0.0 }
 0x432   : > { %v1326_v46 = vmax.f32 %v1281_v41, 0.0  ;;  %v1284_v47 = vpop.f32.mrb[6].mxu0 }
 0x433   : > { %1341 = vst [vmem:[%s2691_s19] sm:$0xff] %v1325_v44  ;;  %v1285_v1 = vadd.f32 %v1284_v47, %v1156_v45  ;;  %v1286_v48 = vpop.f32.mrb[7].mxu0 }
 0x434   : > { %1342 = vst [vmem:[%s2691_s19 + $0x8] sm:$0xff] %v1326_v46  ;;  %v1287_v50 = vadd.f32 %v1286_v48, %v1156_v45 }
 0x435   : > { %v1327_v51 = vmax.f32 %v1285_v1, 0.0 }
 0x436   : > { %v1328_v49 = vmax.f32 %v1287_v50, 0.0  ;;  %v1290_v53 = vpop.f32.mrb[8].mxu0 }
 0x437   : > { %1343 = vst [vmem:[%s2691_s19 + $0x10] sm:$0xff] %v1327_v51  ;;  %v1291_v54 = vadd.f32 %v1290_v53, %v1161_v52  ;;  %v1292_v55 = vpop.f32.mrb[9].mxu0 }
 0x438   : > { %1344 = vst [vmem:[%s2691_s19 + $0x18] sm:$0xff] %v1328_v49  ;;  %v1293_v56 = vadd.f32 %v1292_v55, %v1161_v52 }
 0x439   : > { %v1329_v57 = vmax.f32 %v1291_v54, 0.0 }
 0x43a   : > { %v1330_v60 = vmax.f32 %v1293_v56, 0.0  ;;  %v1296_v62 = vpop.f32.mrb[10].mxu0 }
 0x43b   : > { %1345 = vst [vmem:[%s2691_s19 + $0x20] sm:$0xff] %v1329_v57  ;;  %v1297_v63 = vadd.f32 %v1296_v62, %v1166_v59  ;;  %v1298_v0 = vpop.f32.mrb[11].mxu0 }
 0x43c   : > { %1346 = vst [vmem:[%s2691_s19 + $0x28] sm:$0xff] %v1330_v60  ;;  %v1299_v2 = vadd.f32 %v1298_v0, %v1166_v59 }
 0x43d   : > { %v1331_v3 = vmax.f32 %v1297_v63, 0.0 }
 0x43e   : > { %v1332_v5 = vmax.f32 %v1299_v2, 0.0  ;;  %v1302_v6 = vpop.f32.mrb[12].mxu0 }
 0x43f   : > { %1347 = vst [vmem:[%s2691_s19 + $0x30] sm:$0xff] %v1331_v3  ;;  %v1303_v7 = vadd.f32 %v1302_v6, %v1171_v4  ;;  %v1304_v9 = vpop.f32.mrb[13].mxu0 }
 0x440   : > { %1348 = vst [vmem:[%s2691_s19 + $0x38] sm:$0xff] %v1332_v5  ;;  %v1305_v10 = vadd.f32 %v1304_v9, %v1171_v4 }
 0x441   : > { %v1333_v11 = vmax.f32 %v1303_v7, 0.0 }
 0x442   : > { %v1334_v14 = vmax.f32 %v1305_v10, 0.0  ;;  %v1308_v15 = vpop.f32.mrb[14].mxu0 }
 0x443   : > { %1349 = vst [vmem:[%s2691_s19 + $0x40] sm:$0xff] %v1333_v11  ;;  %v1309_v16 = vadd.f32 %v1308_v15, %v1176_v13  ;;  %v1310_v17 = vpop.f32.mrb[15].mxu0 }
 0x444   : > { %1350 = vst [vmem:[%s2691_s19 + $0x48] sm:$0xff] %v1334_v14  ;;  %v1311_v18 = vadd.f32 %v1310_v17, %v1176_v13 }
 0x445   : > { %v1335_v19 = vmax.f32 %v1309_v16, 0.0 }
 0x446   : > { %v1336_v21 = vmax.f32 %v1311_v18, 0.0  ;;  %v1314_v22 = vpop.f32.mrb[16].mxu0 }
 0x447   : > { %1351 = vst [vmem:[%s2691_s19 + $0x50] sm:$0xff] %v1335_v19  ;;  %v1315_v23 = vadd.f32 %v1314_v22, %v1181_v20  ;;  %v1316_v24 = vpop.f32.mrb[17].mxu0 }
 0x448   : > { %1352 = vst [vmem:[%s2691_s19 + $0x58] sm:$0xff] %v1336_v21  ;;  %v1317_v25 = vadd.f32 %v1316_v24, %v1181_v20 }
 0x449   : > { %v1337_v26 = vmax.f32 %v1315_v23, 0.0 }
 0x44a   : > { %v1338_v28 = vmax.f32 %v1317_v25, 0.0  ;;  %v1320_v29 = vpop.f32.mrb[18].mxu0 }
 0x44b   : > { %1353 = vst [vmem:[%s2691_s19 + $0x60] sm:$0xff] %v1337_v26  ;;  %v1321_v30 = vadd.f32 %v1320_v29, %v1186_v27  ;;  %v1322_v31 = vpop.f32.mrb[19].mxu0 }
 0x44c   : > { %1354 = vst [vmem:[%s2691_s19 + $0x68] sm:$0xff] %v1338_v28  ;;  %v1323_v32 = vadd.f32 %v1322_v31, %v1186_v27 }
 0x44d   : > { %v1339_v33 = vmax.f32 %v1321_v30, 0.0 }
 0x44e   : > { %v1340_v34 = vmax.f32 %v1323_v32, 0.0 }
 0x44f   : > { %1355 = vst [vmem:[%s2691_s19 + $0x70] sm:$0xff] %v1339_v33 }
 0x450   : > { %1356 = vst [vmem:[%s2691_s19 + $0x78] sm:$0xff] %v1340_v34 }
 0x451   : > { %2096 = shalt.err (!%p2093_p9)
}
 0x452   : > { %s2097_s10 = scalar_lea.hbm %s2712_s15, 2048  ;;  %s2101_s22 = scalar_lea.hbm %s2769_s8, 4096 }
 0x453   : > { %p2098_p4 = scmp.ne.s32.totalorder %s2712_s15, %s2097_s10  ;;  %p2102_p5 = scmp.lt.u32.totalorder %s2712_s15, %s2769_s8 }
 0x454   : > { %p2103_p2 = scmp.lt.u32.totalorder %s2101_s22, %s2097_s10  ;;  %p2105_p10 = scmp.lt.u32.totalorder %s2097_s10, %s2712_s15 }
 0x455   : > { %p2099_p3 = pnand %p2098_p4, %p2799_p1 }
 0x456   : > { %p2104_p7 = por %p2103_p2, %p2102_p5 }
 0x457   : > { %p2100_p0 = pneg %p2099_p3 }
 0x458   : > { %p2106_p11 = por %p2105_p10, %p2104_p7 }
 0x45a   : > { %p2107_p12 = pnand %p2106_p11, %p2100_p0 }
 0x45c   : > { %2110 = shalt.err (!%p2107_p12)
}
 0x45d   : > { %s2192_s13 = smov 256  }
 0x45e   : > { %1631 = dma.vmem_to_hbm [thread:$0]  (%p2799_p1), %s2714_s24, 2048, %s2712_s15, %s1358_s11, %s2192_s13, %s2192_s13, %s2189_s18  }
 0x45f PF: > { %s1386_s14 = sand.u32 1, %s2153_s27   ;;  %p2800_p13 = scmp.ne.s32.totalorder %s2786_s26, 0 }
 0x460   : > { %p2801_p8 = scmp.ge.s32.totalorder %s2165_s30, 2  ;;  %s1387_s16 = scalar_lea.sflag [#allocation6], %s1386_s14 }
 0x462   : > { %p1660_p6 = pnand %p2801_p8, %p2800_p13 }
 0x464   : > { %2148 = dma.done.wait (!%p1660_p6), %s1387_s16, 2048  }
 0x465   : > { %2150 = vsyncadd (!%p1660_p6), %s1387_s16, 4294965248  ;;  %p25_p9 = scmp.ge.s32.totalorder %s2446_s17, 4   ;;  %s2802_s27 = smov %s2157_s28 }
 0x466   : > { %s2803_s28 = smov %s2161_s29  ;;  %s2804_s29 = smov %s2458_s21 }
 0x467   : > { %s2805_s30 = smov %s2446_s17  ;;  %27 = sbr.rel (!%p25_p9) target bundleno = 11 (0xb), region = 126 }
 0x46e   :  { %1392 = vsyncpa [#allocation5], 1 }
 0x46f   :  { %1394 = vsyncpa [#allocation5 + $0x1], 1 }
 0x470   :  { %1395 = vsyncpa [#allocation8], 1 }
 0x471   :  { %1396 = vsyncpa [#allocation11], 1 }
 0x472   :  { %1397 = vsyncpa [#allocation14], 1 }
 0x473   :  { %1398 = vsyncpa [#allocation17], 1 }
 0x474   :  { %1399 = vsyncpa [#allocation6], 1 }
 0x475   :  { %1401 = vsyncpa [#allocation6 + $0x1], 1 }

</bundles_post_ra>
